<compile_context>
chip_gen: v7x
topology: tpu7x:2x2x1
jax: 0.10.0
libtpu: 0.0.40
codegen_flags: <defaults>
</compile_context>

<pallas_src>
import functools

import jax
import jax.numpy as jnp
from jax import lax
from jax.experimental import pallas as pl
from jax.experimental.pallas import tpu as pltpu

EPS = 1e-5  # nn.BatchNorm2d default


def resnet_block_kernel(x_ref, w1_ref, g1_ref, b1_ref, w2_ref, g2_ref, b2_ref,
                        out_ref, padf_ref, patch_ref, *, N, C, H, W):
    """Single-program kernel: the whole (small) block is resident in VMEM.

    x_ref    : (N, C, H*W)            input, flattened spatial      [VMEM]
    w*_ref   : (C, 9*C)               conv weights, cols = (kh,kw,ci) [VMEM]
    g*_ref, b*_ref : (C, 1)           BN gamma / beta               [VMEM]
    out_ref  : (N, C, H*W)            residual output               [VMEM]
    padf_ref : (N, C, H*W + 2*(W+1))  flat zero-padded activations  [VMEM scratch]
    patch_ref: (9*C, H*W)             im2col patch matrix           [VMEM scratch]
    """
    HW = H * W
    PAD = W + 1  # flat halo: one row + one pixel of zeros on each side
    f32 = jnp.float32

    # Lane-position masks for the horizontal taps (ow = -1 / +1).  The flat
    # halo of W+1 zeros already handles the vertical (row) taps.
    w_idx = lax.broadcasted_iota(jnp.int32, (C, HW), 1) % W
    mask_l = w_idx >= 1          # ow = -1 valid iff w >= 1
    mask_r = w_idx <= W - 2      # ow = +1 valid iff w <= W-2

    # Zero only the halo of the padded scratch; the interior is overwritten.
    padf_ref[:, :, :PAD] = jnp.zeros((N, C, PAD), f32)
    padf_ref[:, :, PAD + HW:] = jnp.zeros((N, C, PAD), f32)

    def load_padded(src_list):
        # Write (C, H*W) f32 slabs into the scratch interior (halo stays 0).
        for n in range(N):
            padf_ref[n, :, PAD:PAD + HW] = src_list[n]

    def conv3x3(w_ref):
        # im2col from the padded flat scratch, then one MXU matmul per image.
        wmat = w_ref[...]                                   # (C, 9*C)
        outs = []
        for n in range(N):
            for kh in range(3):
                for kw in range(3):
                    start = PAD + (kh - 1) * W + (kw - 1)
                    slab = padf_ref[n, :, start:start + HW]  # (C, H*W) lane-dense
                    if kw == 0:
                        slab = jnp.where(mask_l, slab, 0.0)
                    elif kw == 2:
                        slab = jnp.where(mask_r, slab, 0.0)
                    r = (kh * 3 + kw) * C
                    patch_ref[r:r + C, :] = slab
            outs.append(jnp.dot(wmat, patch_ref[...],
                                precision=lax.Precision.HIGHEST,
                                preferred_element_type=f32))  # (C, H*W)
        return outs

    def batchnorm(act_list, g_ref, b_ref):
        # Training-mode BN over (N, H, W): fused one-pass sum / sum-of-squares
        # (biased variance), affine folded into per-channel scale/shift.
        inv_count = 1.0 / float(N * HW)
        s = jnp.zeros((C, 1), f32)
        sq = jnp.zeros((C, 1), f32)
        for a in act_list:
            s = s + jnp.sum(a, axis=1, keepdims=True)
            sq = sq + jnp.sum(a * a, axis=1, keepdims=True)
        mean = s * inv_count
        var = sq * inv_count - mean * mean
        inv = lax.rsqrt(var + EPS)
        scale = g_ref[...] * inv                 # (C, 1), hoisted per channel
        shift = b_ref[...] - mean * scale        # (C, 1)
        return [a * scale + shift for a in act_list]

    # ---- Conv1 -> BN1 -> ReLU ----
    load_padded([x_ref[n].astype(f32) for n in range(N)])
    h = conv3x3(w1_ref)
    h = batchnorm(h, g1_ref, b1_ref)
    h = [jnp.maximum(a, 0.0) for a in h]

    # ---- Conv2 -> BN2 (padded scratch reused; halo is still zero) ----
    load_padded(h)
    h = conv3x3(w2_ref)
    h = batchnorm(h, g2_ref, b2_ref)

    # ---- Residual add (lane-dense stores) ----
    for n in range(N):
        out_ref[n] = (x_ref[n].astype(f32) + h[n]).astype(out_ref.dtype)


def resnet_block(x, w1, g1, b1, w2, g2, b2):
    """x: (N, C, H, W) float32; conv weights in PyTorch OIHW layout (C, C, 3, 3)."""
    N, C, H, W = x.shape
    HW = H * W

    # Free / tiny host-side reshapes (no extra HBM pass over the activation):
    x2 = x.reshape(N, C, HW)                                   # merge trailing dims
    wm1 = jnp.transpose(w1, (0, 2, 3, 1)).reshape(C, 9 * C)    # cols = (kh, kw, ci)
    wm2 = jnp.transpose(w2, (0, 2, 3, 1)).reshape(C, 9 * C)

    kernel = functools.partial(resnet_block_kernel, N=N, C=C, H=H, W=W)
    vmem = pl.BlockSpec(memory_space=pltpu.MemorySpace.VMEM)

    out = pl.pallas_call(
        kernel,
        out_shape=jax.ShapeDtypeStruct((N, C, HW), jnp.float32),
        in_specs=[vmem] * 7,
        out_specs=vmem,
        scratch_shapes=[
            pltpu.VMEM((N, C, HW + 2 * (W + 1)), jnp.float32),  # flat padded acts
            pltpu.VMEM((9 * C, HW), jnp.float32),               # im2col patches
        ],
    )(x2, wm1, g1.reshape(C, 1), b1.reshape(C, 1),
      wm2, g2.reshape(C, 1), b2.reshape(C, 1))

    return out.reshape(N, C, H, W)


def reference(x, w1, g1, b1, w2, g2, b2):
    """Pure-JAX reference matching PyTorch semantics (training-mode BN)."""
    def conv(h, w):
        return lax.conv_general_dilated(
            h, w, window_strides=(1, 1), padding=((1, 1), (1, 1)),
            dimension_numbers=('NCHW', 'OIHW', 'NCHW'),
            precision=lax.Precision.HIGHEST)

    def bn(h, g, b):
        mean = jnp.mean(h, axis=(0, 2, 3), keepdims=True)
        var = jnp.mean((h - mean) ** 2, axis=(0, 2, 3), keepdims=True)
        return ((h - mean) / jnp.sqrt(var + EPS)) * g[None, :, None, None] \
            + b[None, :, None, None]

    h = jax.nn.relu(bn(conv(x, w1), g1, b1))
    h = bn(conv(h, w2), g2, b2)
    return x + h


if __name__ == "__main__":
    key = jax.random.PRNGKey(0)
    kx, k1, k2 = jax.random.split(key, 3)

    N, C, H, W = 2, 4, 16, 16            # dim = 4
    x = jax.random.normal(kx, (N, C, H, W), jnp.float32)

    # Conv2d has no bias; BN affine params made non-trivial to exercise them.
    w1 = 0.1 * jax.random.normal(k1, (C, C, 3, 3), jnp.float32)
    w2 = 0.1 * jax.random.normal(k2, (C, C, 3, 3), jnp.float32)
    g1 = jnp.linspace(0.5, 1.5, C, dtype=jnp.float32)
    b1 = jnp.linspace(-0.3, 0.3, C, dtype=jnp.float32)
    g2 = jnp.linspace(1.2, 0.8, C, dtype=jnp.float32)
    b2 = jnp.linspace(0.2, -0.2, C, dtype=jnp.float32)

    out = jax.block_until_ready(resnet_block(x, w1, g1, b1, w2, g2, b2))
    ref = reference(x, w1, g1, b1, w2, g2, b2)

    assert out.shape == (N, C, H, W)
    max_err = float(jnp.max(jnp.abs(out - ref)))
    assert jnp.allclose(out, ref, atol=2e-3, rtol=2e-3), max_err
    print("KERNEL_OK")
</pallas_src>

<mosaic_0001>
module attributes {stable_mosaic.version = 11 : i64} {
  func.func @resnet_block_kernel(%arg0: memref<2x4x256xf32, #tpu.memory_space<vmem>>, %arg1: memref<4x36xf32, #tpu.memory_space<vmem>>, %arg2: memref<4x1xf32, #tpu.memory_space<vmem>>, %arg3: memref<4x1xf32, #tpu.memory_space<vmem>>, %arg4: memref<4x36xf32, #tpu.memory_space<vmem>>, %arg5: memref<4x1xf32, #tpu.memory_space<vmem>>, %arg6: memref<4x1xf32, #tpu.memory_space<vmem>>, %arg7: memref<2x4x256xf32, #tpu.memory_space<vmem>>, %arg8: memref<2x4x290xf32, #tpu.memory_space<vmem>>, %arg9: memref<36x256xf32, #tpu.memory_space<vmem>>) attributes {dimension_semantics = [], scalar_prefetch = 0 : i64, scratch_operands = 2 : i64, tpu.core_type = #tpu.core_type<tc>} {
    %0 = tpu.iota {dimensions = array<i32: 1>} : vector<4x256xi32>
    %c16_i32 = arith.constant 16 : i32
    %c0_i32 = arith.constant 0 : i32
    %1 = arith.cmpi eq, %c16_i32, %c0_i32 : i32
    %c1_i32 = arith.constant 1 : i32
    %2 = arith.select %1, %c1_i32, %c16_i32 : i32
    %3 = vector.broadcast %2 : i32 to vector<4x256xi32>
    %4 = arith.remsi %0, %3 : vector<4x256xi32>
    %c0_i32_0 = arith.constant 0 : i32
    %5 = vector.broadcast %c0_i32_0 : i32 to vector<4x256xi32>
    %6 = arith.cmpi ne, %4, %5 : vector<4x256xi32>
    %c0_i32_1 = arith.constant 0 : i32
    %7 = vector.broadcast %c0_i32_1 : i32 to vector<4x256xi32>
    %8 = arith.cmpi slt, %4, %7 : vector<4x256xi32>
    %c0_i32_2 = arith.constant 0 : i32
    %9 = arith.cmpi slt, %2, %c0_i32_2 : i32
    %10 = vector.broadcast %9 : i1 to vector<4x256xi1>
    %11 = vector.broadcast %10 : vector<4x256xi1> to vector<4x256xi1>
    %12 = arith.xori %8, %11 : vector<4x256xi1>
    %13 = arith.andi %12, %6 : vector<4x256xi1>
    %14 = vector.broadcast %2 : i32 to vector<4x256xi32>
    %15 = arith.addi %4, %14 : vector<4x256xi32>
    %16 = arith.select %13, %15, %4 : vector<4x256xi1>, vector<4x256xi32>
    %c1_i32_3 = arith.constant 1 : i32
    %17 = vector.broadcast %c1_i32_3 : i32 to vector<4x256xi32>
    %18 = arith.cmpi sge, %16, %17 : vector<4x256xi32>
    %c14_i32 = arith.constant 14 : i32
    %19 = vector.broadcast %c14_i32 : i32 to vector<4x256xi32>
    %20 = arith.cmpi sle, %16, %19 : vector<4x256xi32>
    %cst = arith.constant 0.000000e+00 : f32
    %21 = vector.broadcast %cst : f32 to vector<2x4x17xf32>
    %c0 = arith.constant 0 : index
    %c0_4 = arith.constant 0 : index
    %c0_5 = arith.constant 0 : index
    %22 = vector.load %arg8[%c0, %c0_4, %c0_5] : memref<2x4x290xf32, #tpu.memory_space<vmem>>, vector<2x4x17xf32>
    tpu.vector_store %arg8[%c0, %c0_4, %c0_5], %21 {strides = array<i32>} : memref<2x4x290xf32, #tpu.memory_space<vmem>>, vector<2x4x17xf32>,
    %cst_6 = arith.constant 0.000000e+00 : f32
    %23 = vector.broadcast %cst_6 : f32 to vector<2x4x17xf32>
    %c0_7 = arith.constant 0 : index
    %c0_8 = arith.constant 0 : index
    %c273 = arith.constant 273 : index
    %24 = vector.load %arg8[%c0_7, %c0_8, %c273] : memref<2x4x290xf32, #tpu.memory_space<vmem>>, vector<2x4x17xf32>
    tpu.vector_store %arg8[%c0_7, %c0_8, %c273], %23 {strides = array<i32>} : memref<2x4x290xf32, #tpu.memory_space<vmem>>, vector<2x4x17xf32>,
    %c0_9 = arith.constant 0 : index
    %c0_10 = arith.constant 0 : index
    %c0_11 = arith.constant 0 : index
    %25 = vector.load %arg0[%c0_9, %c0_10, %c0_11] : memref<2x4x256xf32, #tpu.memory_space<vmem>>, vector<1x4x256xf32>
    %26 = vector.shape_cast %25 : vector<1x4x256xf32> to vector<4x256xf32>
    %c1 = arith.constant 1 : index
    %c0_12 = arith.constant 0 : index
    %c0_13 = arith.constant 0 : index
    %27 = vector.load %arg0[%c1, %c0_12, %c0_13] : memref<2x4x256xf32, #tpu.memory_space<vmem>>, vector<1x4x256xf32>
    %28 = vector.shape_cast %27 : vector<1x4x256xf32> to vector<4x256xf32>
    %c0_14 = arith.constant 0 : index
    %c0_15 = arith.constant 0 : index
    %c17 = arith.constant 17 : index
    %29 = vector.load %arg8[%c0_14, %c0_15, %c17] : memref<2x4x290xf32, #tpu.memory_space<vmem>>, vector<1x4x256xf32>
    %30 = vector.shape_cast %29 : vector<1x4x256xf32> to vector<4x256xf32>
    %31 = vector.shape_cast %26 : vector<4x256xf32> to vector<1x4x256xf32>
    tpu.vector_store %arg8[%c0_14, %c0_15, %c17], %31 {strides = array<i32>} : memref<2x4x290xf32, #tpu.memory_space<vmem>>, vector<1x4x256xf32>,
    %c1_16 = arith.constant 1 : index
    %c0_17 = arith.constant 0 : index
    %c17_18 = arith.constant 17 : index
    %32 = vector.load %arg8[%c1_16, %c0_17, %c17_18] : memref<2x4x290xf32, #tpu.memory_space<vmem>>, vector<1x4x256xf32>
    %33 = vector.shape_cast %32 : vector<1x4x256xf32> to vector<4x256xf32>
    %34 = vector.shape_cast %28 : vector<4x256xf32> to vector<1x4x256xf32>
    tpu.vector_store %arg8[%c1_16, %c0_17, %c17_18], %34 {strides = array<i32>} : memref<2x4x290xf32, #tpu.memory_space<vmem>>, vector<1x4x256xf32>,
    %c0_19 = arith.constant 0 : index
    %c0_20 = arith.constant 0 : index
    %35 = vector.load %arg1[%c0_19, %c0_20] : memref<4x36xf32, #tpu.memory_space<vmem>>, vector<4x36xf32>
    %c0_21 = arith.constant 0 : index
    %c0_22 = arith.constant 0 : index
    %c0_23 = arith.constant 0 : index
    %36 = vector.load %arg8[%c0_21, %c0_22, %c0_23] : memref<2x4x290xf32, #tpu.memory_space<vmem>>, vector<1x4x256xf32>
    %37 = vector.shape_cast %36 : vector<1x4x256xf32> to vector<4x256xf32>
    %cst_24 = arith.constant 0.000000e+00 : f32
    %38 = vector.broadcast %cst_24 : f32 to vector<4x256xf32>
    %39 = arith.select %18, %37, %38 : vector<4x256xi1>, vector<4x256xf32>
    %c0_25 = arith.constant 0 : index
    %c0_26 = arith.constant 0 : index
    %40 = vector.load %arg9[%c0_25, %c0_26] : memref<36x256xf32, #tpu.memory_space<vmem>>, vector<4x256xf32>
    tpu.vector_store %arg9[%c0_25, %c0_26], %39 {strides = array<i32>} : memref<36x256xf32, #tpu.memory_space<vmem>>, vector<4x256xf32>,
    %c0_27 = arith.constant 0 : index
    %c0_28 = arith.constant 0 : index
    %c1_29 = arith.constant 1 : index
    %41 = vector.load %arg8[%c0_27, %c0_28, %c1_29] : memref<2x4x290xf32, #tpu.memory_space<vmem>>, vector<1x4x256xf32>
    %42 = vector.shape_cast %41 : vector<1x4x256xf32> to vector<4x256xf32>
    %c4 = arith.constant 4 : index
    %c0_30 = arith.constant 0 : index
    %43 = vector.load %arg9[%c4, %c0_30] : memref<36x256xf32, #tpu.memory_space<vmem>>, vector<4x256xf32>
    tpu.vector_store %arg9[%c4, %c0_30], %42 {strides = array<i32>} : memref<36x256xf32, #tpu.memory_space<vmem>>, vector<4x256xf32>,
    %c0_31 = arith.constant 0 : index
    %c0_32 = arith.constant 0 : index
    %c2 = arith.constant 2 : index
    %44 = vector.load %arg8[%c0_31, %c0_32, %c2] : memref<2x4x290xf32, #tpu.memory_space<vmem>>, vector<1x4x256xf32>
    %45 = vector.shape_cast %44 : vector<1x4x256xf32> to vector<4x256xf32>
    %cst_33 = arith.constant 0.000000e+00 : f32
    %46 = vector.broadcast %cst_33 : f32 to vector<4x256xf32>
    %47 = arith.select %20, %45, %46 : vector<4x256xi1>, vector<4x256xf32>
    %c8 = arith.constant 8 : index
    %c0_34 = arith.constant 0 : index
    %48 = vector.load %arg9[%c8, %c0_34] : memref<36x256xf32, #tpu.memory_space<vmem>>, vector<4x256xf32>
    tpu.vector_store %arg9[%c8, %c0_34], %47 {strides = array<i32>} : memref<36x256xf32, #tpu.memory_space<vmem>>, vector<4x256xf32>,
    %c0_35 = arith.constant 0 : index
    %c0_36 = arith.constant 0 : index
    %c16 = arith.constant 16 : index
    %49 = vector.load %arg8[%c0_35, %c0_36, %c16] : memref<2x4x290xf32, #tpu.memory_space<vmem>>, vector<1x4x256xf32>
    %50 = vector.shape_cast %49 : vector<1x4x256xf32> to vector<4x256xf32>
    %cst_37 = arith.constant 0.000000e+00 : f32
    %51 = vector.broadcast %cst_37 : f32 to vector<4x256xf32>
    %52 = arith.select %18, %50, %51 : vector<4x256xi1>, vector<4x256xf32>
    %c12 = arith.constant 12 : index
    %c0_38 = arith.constant 0 : index
    %53 = vector.load %arg9[%c12, %c0_38] : memref<36x256xf32, #tpu.memory_space<vmem>>, vector<4x256xf32>
    tpu.vector_store %arg9[%c12, %c0_38], %52 {strides = array<i32>} : memref<36x256xf32, #tpu.memory_space<vmem>>, vector<4x256xf32>,
    %c0_39 = arith.constant 0 : index
    %c0_40 = arith.constant 0 : index
    %c17_41 = arith.constant 17 : index
    %54 = vector.load %arg8[%c0_39, %c0_40, %c17_41] : memref<2x4x290xf32, #tpu.memory_space<vmem>>, vector<1x4x256xf32>
    %55 = vector.shape_cast %54 : vector<1x4x256xf32> to vector<4x256xf32>
    %c16_42 = arith.constant 16 : index
    %c0_43 = arith.constant 0 : index
    %56 = vector.load %arg9[%c16_42, %c0_43] : memref<36x256xf32, #tpu.memory_space<vmem>>, vector<4x256xf32>
    tpu.vector_store %arg9[%c16_42, %c0_43], %55 {strides = array<i32>} : memref<36x256xf32, #tpu.memory_space<vmem>>, vector<4x256xf32>,
    %c0_44 = arith.constant 0 : index
    %c0_45 = arith.constant 0 : index
    %c18 = arith.constant 18 : index
    %57 = vector.load %arg8[%c0_44, %c0_45, %c18] : memref<2x4x290xf32, #tpu.memory_space<vmem>>, vector<1x4x256xf32>
    %58 = vector.shape_cast %57 : vector<1x4x256xf32> to vector<4x256xf32>
    %cst_46 = arith.constant 0.000000e+00 : f32
    %59 = vector.broadcast %cst_46 : f32 to vector<4x256xf32>
    %60 = arith.select %20, %58, %59 : vector<4x256xi1>, vector<4x256xf32>
    %c20 = arith.constant 20 : index
    %c0_47 = arith.constant 0 : index
    %61 = vector.load %arg9[%c20, %c0_47] : memref<36x256xf32, #tpu.memory_space<vmem>>, vector<4x256xf32>
    tpu.vector_store %arg9[%c20, %c0_47], %60 {strides = array<i32>} : memref<36x256xf32, #tpu.memory_space<vmem>>, vector<4x256xf32>,
    %c0_48 = arith.constant 0 : index
    %c0_49 = arith.constant 0 : index
    %c32 = arith.constant 32 : index
    %62 = vector.load %arg8[%c0_48, %c0_49, %c32] : memref<2x4x290xf32, #tpu.memory_space<vmem>>, vector<1x4x256xf32>
    %63 = vector.shape_cast %62 : vector<1x4x256xf32> to vector<4x256xf32>
    %cst_50 = arith.constant 0.000000e+00 : f32
    %64 = vector.broadcast %cst_50 : f32 to vector<4x256xf32>
    %65 = arith.select %18, %63, %64 : vector<4x256xi1>, vector<4x256xf32>
    %c24 = arith.constant 24 : index
    %c0_51 = arith.constant 0 : index
    %66 = vector.load %arg9[%c24, %c0_51] : memref<36x256xf32, #tpu.memory_space<vmem>>, vector<4x256xf32>
    tpu.vector_store %arg9[%c24, %c0_51], %65 {strides = array<i32>} : memref<36x256xf32, #tpu.memory_space<vmem>>, vector<4x256xf32>,
    %c0_52 = arith.constant 0 : index
    %c0_53 = arith.constant 0 : index
    %c33 = arith.constant 33 : index
    %67 = vector.load %arg8[%c0_52, %c0_53, %c33] : memref<2x4x290xf32, #tpu.memory_space<vmem>>, vector<1x4x256xf32>
    %68 = vector.shape_cast %67 : vector<1x4x256xf32> to vector<4x256xf32>
    %c28 = arith.constant 28 : index
    %c0_54 = arith.constant 0 : index
    %69 = vector.load %arg9[%c28, %c0_54] : memref<36x256xf32, #tpu.memory_space<vmem>>, vector<4x256xf32>
    tpu.vector_store %arg9[%c28, %c0_54], %68 {strides = array<i32>} : memref<36x256xf32, #tpu.memory_space<vmem>>, vector<4x256xf32>,
    %c0_55 = arith.constant 0 : index
    %c0_56 = arith.constant 0 : index
    %c34 = arith.constant 34 : index
    %70 = vector.load %arg8[%c0_55, %c0_56, %c34] : memref<2x4x290xf32, #tpu.memory_space<vmem>>, vector<1x4x256xf32>
    %71 = vector.shape_cast %70 : vector<1x4x256xf32> to vector<4x256xf32>
    %cst_57 = arith.constant 0.000000e+00 : f32
    %72 = vector.broadcast %cst_57 : f32 to vector<4x256xf32>
    %73 = arith.select %20, %71, %72 : vector<4x256xi1>, vector<4x256xf32>
    %c32_58 = arith.constant 32 : index
    %c0_59 = arith.constant 0 : index
    %74 = vector.load %arg9[%c32_58, %c0_59] : memref<36x256xf32, #tpu.memory_space<vmem>>, vector<4x256xf32>
    tpu.vector_store %arg9[%c32_58, %c0_59], %73 {strides = array<i32>} : memref<36x256xf32, #tpu.memory_space<vmem>>, vector<4x256xf32>,
    %c0_60 = arith.constant 0 : index
    %c0_61 = arith.constant 0 : index
    %75 = vector.load %arg9[%c0_60, %c0_61] : memref<36x256xf32, #tpu.memory_space<vmem>>, vector<36x256xf32>
    %cst_62 = arith.constant dense<0.000000e+00> : vector<4x256xf32>
    %76 = tpu.matmul %35, %75, %cst_62 {dimension_numbers = #tpu.dot_dimension_numbers<[1], [0], [0], [1], [0, 0, 1, 1], [], []>, precision = #tpu.contract_precision<fp32>} : vector<4x36xf32>, vector<36x256xf32>, vector<4x256xf32> -> vector<4x256xf32>
    %c1_63 = arith.constant 1 : index
    %c0_64 = arith.constant 0 : index
    %c0_65 = arith.constant 0 : index
    %77 = vector.load %arg8[%c1_63, %c0_64, %c0_65] : memref<2x4x290xf32, #tpu.memory_space<vmem>>, vector<1x4x256xf32>
    %78 = vector.shape_cast %77 : vector<1x4x256xf32> to vector<4x256xf32>
    %cst_66 = arith.constant 0.000000e+00 : f32
    %79 = vector.broadcast %cst_66 : f32 to vector<4x256xf32>
    %80 = arith.select %18, %78, %79 : vector<4x256xi1>, vector<4x256xf32>
    %c0_67 = arith.constant 0 : index
    %c0_68 = arith.constant 0 : index
    %81 = vector.load %arg9[%c0_67, %c0_68] : memref<36x256xf32, #tpu.memory_space<vmem>>, vector<4x256xf32>
    tpu.vector_store %arg9[%c0_67, %c0_68], %80 {strides = array<i32>} : memref<36x256xf32, #tpu.memory_space<vmem>>, vector<4x256xf32>,
    %c1_69 = arith.constant 1 : index
    %c0_70 = arith.constant 0 : index
    %c1_71 = arith.constant 1 : index
    %82 = vector.load %arg8[%c1_69, %c0_70, %c1_71] : memref<2x4x290xf32, #tpu.memory_space<vmem>>, vector<1x4x256xf32>
    %83 = vector.shape_cast %82 : vector<1x4x256xf32> to vector<4x256xf32>
    %c4_72 = arith.constant 4 : index
    %c0_73 = arith.constant 0 : index
    %84 = vector.load %arg9[%c4_72, %c0_73] : memref<36x256xf32, #tpu.memory_space<vmem>>, vector<4x256xf32>
    tpu.vector_store %arg9[%c4_72, %c0_73], %83 {strides = array<i32>} : memref<36x256xf32, #tpu.memory_space<vmem>>, vector<4x256xf32>,
    %c1_74 = arith.constant 1 : index
    %c0_75 = arith.constant 0 : index
    %c2_76 = arith.constant 2 : index
    %85 = vector.load %arg8[%c1_74, %c0_75, %c2_76] : memref<2x4x290xf32, #tpu.memory_space<vmem>>, vector<1x4x256xf32>
    %86 = vector.shape_cast %85 : vector<1x4x256xf32> to vector<4x256xf32>
    %cst_77 = arith.constant 0.000000e+00 : f32
    %87 = vector.broadcast %cst_77 : f32 to vector<4x256xf32>
    %88 = arith.select %20, %86, %87 : vector<4x256xi1>, vector<4x256xf32>
    %c8_78 = arith.constant 8 : index
    %c0_79 = arith.constant 0 : index
    %89 = vector.load %arg9[%c8_78, %c0_79] : memref<36x256xf32, #tpu.memory_space<vmem>>, vector<4x256xf32>
    tpu.vector_store %arg9[%c8_78, %c0_79], %88 {strides = array<i32>} : memref<36x256xf32, #tpu.memory_space<vmem>>, vector<4x256xf32>,
    %c1_80 = arith.constant 1 : index
    %c0_81 = arith.constant 0 : index
    %c16_82 = arith.constant 16 : index
    %90 = vector.load %arg8[%c1_80, %c0_81, %c16_82] : memref<2x4x290xf32, #tpu.memory_space<vmem>>, vector<1x4x256xf32>
    %91 = vector.shape_cast %90 : vector<1x4x256xf32> to vector<4x256xf32>
    %cst_83 = arith.constant 0.000000e+00 : f32
    %92 = vector.broadcast %cst_83 : f32 to vector<4x256xf32>
    %93 = arith.select %18, %91, %92 : vector<4x256xi1>, vector<4x256xf32>
    %c12_84 = arith.constant 12 : index
    %c0_85 = arith.constant 0 : index
    %94 = vector.load %arg9[%c12_84, %c0_85] : memref<36x256xf32, #tpu.memory_space<vmem>>, vector<4x256xf32>
    tpu.vector_store %arg9[%c12_84, %c0_85], %93 {strides = array<i32>} : memref<36x256xf32, #tpu.memory_space<vmem>>, vector<4x256xf32>,
    %c1_86 = arith.constant 1 : index
    %c0_87 = arith.constant 0 : index
    %c17_88 = arith.constant 17 : index
    %95 = vector.load %arg8[%c1_86, %c0_87, %c17_88] : memref<2x4x290xf32, #tpu.memory_space<vmem>>, vector<1x4x256xf32>
    %96 = vector.shape_cast %95 : vector<1x4x256xf32> to vector<4x256xf32>
    %c16_89 = arith.constant 16 : index
    %c0_90 = arith.constant 0 : index
    %97 = vector.load %arg9[%c16_89, %c0_90] : memref<36x256xf32, #tpu.memory_space<vmem>>, vector<4x256xf32>
    tpu.vector_store %arg9[%c16_89, %c0_90], %96 {strides = array<i32>} : memref<36x256xf32, #tpu.memory_space<vmem>>, vector<4x256xf32>,
    %c1_91 = arith.constant 1 : index
    %c0_92 = arith.constant 0 : index
    %c18_93 = arith.constant 18 : index
    %98 = vector.load %arg8[%c1_91, %c0_92, %c18_93] : memref<2x4x290xf32, #tpu.memory_space<vmem>>, vector<1x4x256xf32>
    %99 = vector.shape_cast %98 : vector<1x4x256xf32> to vector<4x256xf32>
    %cst_94 = arith.constant 0.000000e+00 : f32
    %100 = vector.broadcast %cst_94 : f32 to vector<4x256xf32>
    %101 = arith.select %20, %99, %100 : vector<4x256xi1>, vector<4x256xf32>
    %c20_95 = arith.constant 20 : index
    %c0_96 = arith.constant 0 : index
    %102 = vector.load %arg9[%c20_95, %c0_96] : memref<36x256xf32, #tpu.memory_space<vmem>>, vector<4x256xf32>
    tpu.vector_store %arg9[%c20_95, %c0_96], %101 {strides = array<i32>} : memref<36x256xf32, #tpu.memory_space<vmem>>, vector<4x256xf32>,
    %c1_97 = arith.constant 1 : index
    %c0_98 = arith.constant 0 : index
    %c32_99 = arith.constant 32 : index
    %103 = vector.load %arg8[%c1_97, %c0_98, %c32_99] : memref<2x4x290xf32, #tpu.memory_space<vmem>>, vector<1x4x256xf32>
    %104 = vector.shape_cast %103 : vector<1x4x256xf32> to vector<4x256xf32>
    %cst_100 = arith.constant 0.000000e+00 : f32
    %105 = vector.broadcast %cst_100 : f32 to vector<4x256xf32>
    %106 = arith.select %18, %104, %105 : vector<4x256xi1>, vector<4x256xf32>
    %c24_101 = arith.constant 24 : index
    %c0_102 = arith.constant 0 : index
    %107 = vector.load %arg9[%c24_101, %c0_102] : memref<36x256xf32, #tpu.memory_space<vmem>>, vector<4x256xf32>
    tpu.vector_store %arg9[%c24_101, %c0_102], %106 {strides = array<i32>} : memref<36x256xf32, #tpu.memory_space<vmem>>, vector<4x256xf32>,
    %c1_103 = arith.constant 1 : index
    %c0_104 = arith.constant 0 : index
    %c33_105 = arith.constant 33 : index
    %108 = vector.load %arg8[%c1_103, %c0_104, %c33_105] : memref<2x4x290xf32, #tpu.memory_space<vmem>>, vector<1x4x256xf32>
    %109 = vector.shape_cast %108 : vector<1x4x256xf32> to vector<4x256xf32>
    %c28_106 = arith.constant 28 : index
    %c0_107 = arith.constant 0 : index
    %110 = vector.load %arg9[%c28_106, %c0_107] : memref<36x256xf32, #tpu.memory_space<vmem>>, vector<4x256xf32>
    tpu.vector_store %arg9[%c28_106, %c0_107], %109 {strides = array<i32>} : memref<36x256xf32, #tpu.memory_space<vmem>>, vector<4x256xf32>,
    %c1_108 = arith.constant 1 : index
    %c0_109 = arith.constant 0 : index
    %c34_110 = arith.constant 34 : index
    %111 = vector.load %arg8[%c1_108, %c0_109, %c34_110] : memref<2x4x290xf32, #tpu.memory_space<vmem>>, vector<1x4x256xf32>
    %112 = vector.shape_cast %111 : vector<1x4x256xf32> to vector<4x256xf32>
    %cst_111 = arith.constant 0.000000e+00 : f32
    %113 = vector.broadcast %cst_111 : f32 to vector<4x256xf32>
    %114 = arith.select %20, %112, %113 : vector<4x256xi1>, vector<4x256xf32>
    %c32_112 = arith.constant 32 : index
    %c0_113 = arith.constant 0 : index
    %115 = vector.load %arg9[%c32_112, %c0_113] : memref<36x256xf32, #tpu.memory_space<vmem>>, vector<4x256xf32>
    tpu.vector_store %arg9[%c32_112, %c0_113], %114 {strides = array<i32>} : memref<36x256xf32, #tpu.memory_space<vmem>>, vector<4x256xf32>,
    %c0_114 = arith.constant 0 : index
    %c0_115 = arith.constant 0 : index
    %116 = vector.load %arg9[%c0_114, %c0_115] : memref<36x256xf32, #tpu.memory_space<vmem>>, vector<36x256xf32>
    %cst_116 = arith.constant dense<0.000000e+00> : vector<4x256xf32>
    %117 = tpu.matmul %35, %116, %cst_116 {dimension_numbers = #tpu.dot_dimension_numbers<[1], [0], [0], [1], [0, 0, 1, 1], [], []>, precision = #tpu.contract_precision<fp32>} : vector<4x36xf32>, vector<36x256xf32>, vector<4x256xf32> -> vector<4x256xf32>
    %cst_117 = arith.constant 0.000000e+00 : f32
    %118 = vector.broadcast %cst_117 : f32 to vector<4x1xf32>
    %cst_118 = arith.constant 0.000000e+00 : f32
    %119 = vector.broadcast %cst_118 : f32 to vector<4x1xf32>
    %cst_119 = arith.constant dense<0.000000e+00> : vector<4xf32>
    %120 = vector.multi_reduction <add>, %76, %cst_119 [1] : vector<4x256xf32> to vector<4xf32>
    %121 = vector.shape_cast %120 : vector<4xf32> to vector<4x1xf32>
    %122 = arith.addf %118, %121 : vector<4x1xf32>
    %123 = arith.mulf %76, %76 : vector<4x256xf32>
    %cst_120 = arith.constant dense<0.000000e+00> : vector<4xf32>
    %124 = vector.multi_reduction <add>, %123, %cst_120 [1] : vector<4x256xf32> to vector<4xf32>
    %125 = vector.shape_cast %124 : vector<4xf32> to vector<4x1xf32>
    %126 = arith.addf %119, %125 : vector<4x1xf32>
    %cst_121 = arith.constant dense<0.000000e+00> : vector<4xf32>
    %127 = vector.multi_reduction <add>, %117, %cst_121 [1] : vector<4x256xf32> to vector<4xf32>
    %128 = vector.shape_cast %127 : vector<4xf32> to vector<4x1xf32>
    %129 = arith.addf %122, %128 : vector<4x1xf32>
    %130 = arith.mulf %117, %117 : vector<4x256xf32>
    %cst_122 = arith.constant dense<0.000000e+00> : vector<4xf32>
    %131 = vector.multi_reduction <add>, %130, %cst_122 [1] : vector<4x256xf32> to vector<4xf32>
    %132 = vector.shape_cast %131 : vector<4xf32> to vector<4x1xf32>
    %133 = arith.addf %126, %132 : vector<4x1xf32>
    %cst_123 = arith.constant 0.001953125 : f32
    %134 = vector.broadcast %cst_123 : f32 to vector<4x1xf32>
    %135 = arith.mulf %129, %134 : vector<4x1xf32>
    %cst_124 = arith.constant 0.001953125 : f32
    %136 = vector.broadcast %cst_124 : f32 to vector<4x1xf32>
    %137 = arith.mulf %133, %136 : vector<4x1xf32>
    %138 = arith.mulf %135, %135 : vector<4x1xf32>
    %139 = arith.subf %137, %138 : vector<4x1xf32>
    %cst_125 = arith.constant 9.99999974E-6 : f32
    %140 = vector.broadcast %cst_125 : f32 to vector<4x1xf32>
    %141 = arith.addf %139, %140 : vector<4x1xf32>
    %142 = math.rsqrt %141 : vector<4x1xf32>
    %c0_126 = arith.constant 0 : index
    %c0_127 = arith.constant 0 : index
    %143 = vector.load %arg2[%c0_126, %c0_127] : memref<4x1xf32, #tpu.memory_space<vmem>>, vector<4x1xf32>
    %144 = arith.mulf %143, %142 : vector<4x1xf32>
    %c0_128 = arith.constant 0 : index
    %c0_129 = arith.constant 0 : index
    %145 = vector.load %arg3[%c0_128, %c0_129] : memref<4x1xf32, #tpu.memory_space<vmem>>, vector<4x1xf32>
    %146 = arith.mulf %135, %144 : vector<4x1xf32>
    %147 = arith.subf %145, %146 : vector<4x1xf32>
    %148 = vector.broadcast %144 : vector<4x1xf32> to vector<4x256xf32>
    %149 = arith.mulf %76, %148 : vector<4x256xf32>
    %150 = vector.broadcast %147 : vector<4x1xf32> to vector<4x256xf32>
    %151 = arith.addf %149, %150 : vector<4x256xf32>
    %152 = vector.broadcast %144 : vector<4x1xf32> to vector<4x256xf32>
    %153 = arith.mulf %117, %152 : vector<4x256xf32>
    %154 = vector.broadcast %147 : vector<4x1xf32> to vector<4x256xf32>
    %155 = arith.addf %153, %154 : vector<4x256xf32>
    %cst_130 = arith.constant 0.000000e+00 : f32
    %156 = vector.broadcast %cst_130 : f32 to vector<4x256xf32>
    %157 = arith.maximumf %151, %156 : vector<4x256xf32>
    %cst_131 = arith.constant 0.000000e+00 : f32
    %158 = vector.broadcast %cst_131 : f32 to vector<4x256xf32>
    %159 = arith.maximumf %155, %158 : vector<4x256xf32>
    %c0_132 = arith.constant 0 : index
    %c0_133 = arith.constant 0 : index
    %c17_134 = arith.constant 17 : index
    %160 = vector.load %arg8[%c0_132, %c0_133, %c17_134] : memref<2x4x290xf32, #tpu.memory_space<vmem>>, vector<1x4x256xf32>
    %161 = vector.shape_cast %160 : vector<1x4x256xf32> to vector<4x256xf32>
    %162 = vector.shape_cast %157 : vector<4x256xf32> to vector<1x4x256xf32>
    tpu.vector_store %arg8[%c0_132, %c0_133, %c17_134], %162 {strides = array<i32>} : memref<2x4x290xf32, #tpu.memory_space<vmem>>, vector<1x4x256xf32>,
    %c1_135 = arith.constant 1 : index
    %c0_136 = arith.constant 0 : index
    %c17_137 = arith.constant 17 : index
    %163 = vector.load %arg8[%c1_135, %c0_136, %c17_137] : memref<2x4x290xf32, #tpu.memory_space<vmem>>, vector<1x4x256xf32>
    %164 = vector.shape_cast %163 : vector<1x4x256xf32> to vector<4x256xf32>
    %165 = vector.shape_cast %159 : vector<4x256xf32> to vector<1x4x256xf32>
    tpu.vector_store %arg8[%c1_135, %c0_136, %c17_137], %165 {strides = array<i32>} : memref<2x4x290xf32, #tpu.memory_space<vmem>>, vector<1x4x256xf32>,
    %c0_138 = arith.constant 0 : index
    %c0_139 = arith.constant 0 : index
    %166 = vector.load %arg4[%c0_138, %c0_139] : memref<4x36xf32, #tpu.memory_space<vmem>>, vector<4x36xf32>
    %c0_140 = arith.constant 0 : index
    %c0_141 = arith.constant 0 : index
    %c0_142 = arith.constant 0 : index
    %167 = vector.load %arg8[%c0_140, %c0_141, %c0_142] : memref<2x4x290xf32, #tpu.memory_space<vmem>>, vector<1x4x256xf32>
    %168 = vector.shape_cast %167 : vector<1x4x256xf32> to vector<4x256xf32>
    %cst_143 = arith.constant 0.000000e+00 : f32
    %169 = vector.broadcast %cst_143 : f32 to vector<4x256xf32>
    %170 = arith.select %18, %168, %169 : vector<4x256xi1>, vector<4x256xf32>
    %c0_144 = arith.constant 0 : index
    %c0_145 = arith.constant 0 : index
    %171 = vector.load %arg9[%c0_144, %c0_145] : memref<36x256xf32, #tpu.memory_space<vmem>>, vector<4x256xf32>
    tpu.vector_store %arg9[%c0_144, %c0_145], %170 {strides = array<i32>} : memref<36x256xf32, #tpu.memory_space<vmem>>, vector<4x256xf32>,
    %c0_146 = arith.constant 0 : index
    %c0_147 = arith.constant 0 : index
    %c1_148 = arith.constant 1 : index
    %172 = vector.load %arg8[%c0_146, %c0_147, %c1_148] : memref<2x4x290xf32, #tpu.memory_space<vmem>>, vector<1x4x256xf32>
    %173 = vector.shape_cast %172 : vector<1x4x256xf32> to vector<4x256xf32>
    %c4_149 = arith.constant 4 : index
    %c0_150 = arith.constant 0 : index
    %174 = vector.load %arg9[%c4_149, %c0_150] : memref<36x256xf32, #tpu.memory_space<vmem>>, vector<4x256xf32>
    tpu.vector_store %arg9[%c4_149, %c0_150], %173 {strides = array<i32>} : memref<36x256xf32, #tpu.memory_space<vmem>>, vector<4x256xf32>,
    %c0_151 = arith.constant 0 : index
    %c0_152 = arith.constant 0 : index
    %c2_153 = arith.constant 2 : index
    %175 = vector.load %arg8[%c0_151, %c0_152, %c2_153] : memref<2x4x290xf32, #tpu.memory_space<vmem>>, vector<1x4x256xf32>
    %176 = vector.shape_cast %175 : vector<1x4x256xf32> to vector<4x256xf32>
    %cst_154 = arith.constant 0.000000e+00 : f32
    %177 = vector.broadcast %cst_154 : f32 to vector<4x256xf32>
    %178 = arith.select %20, %176, %177 : vector<4x256xi1>, vector<4x256xf32>
    %c8_155 = arith.constant 8 : index
    %c0_156 = arith.constant 0 : index
    %179 = vector.load %arg9[%c8_155, %c0_156] : memref<36x256xf32, #tpu.memory_space<vmem>>, vector<4x256xf32>
    tpu.vector_store %arg9[%c8_155, %c0_156], %178 {strides = array<i32>} : memref<36x256xf32, #tpu.memory_space<vmem>>, vector<4x256xf32>,
    %c0_157 = arith.constant 0 : index
    %c0_158 = arith.constant 0 : index
    %c16_159 = arith.constant 16 : index
    %180 = vector.load %arg8[%c0_157, %c0_158, %c16_159] : memref<2x4x290xf32, #tpu.memory_space<vmem>>, vector<1x4x256xf32>
    %181 = vector.shape_cast %180 : vector<1x4x256xf32> to vector<4x256xf32>
    %cst_160 = arith.constant 0.000000e+00 : f32
    %182 = vector.broadcast %cst_160 : f32 to vector<4x256xf32>
    %183 = arith.select %18, %181, %182 : vector<4x256xi1>, vector<4x256xf32>
    %c12_161 = arith.constant 12 : index
    %c0_162 = arith.constant 0 : index
    %184 = vector.load %arg9[%c12_161, %c0_162] : memref<36x256xf32, #tpu.memory_space<vmem>>, vector<4x256xf32>
    tpu.vector_store %arg9[%c12_161, %c0_162], %183 {strides = array<i32>} : memref<36x256xf32, #tpu.memory_space<vmem>>, vector<4x256xf32>,
    %c0_163 = arith.constant 0 : index
    %c0_164 = arith.constant 0 : index
    %c17_165 = arith.constant 17 : index
    %185 = vector.load %arg8[%c0_163, %c0_164, %c17_165] : memref<2x4x290xf32, #tpu.memory_space<vmem>>, vector<1x4x256xf32>
    %186 = vector.shape_cast %185 : vector<1x4x256xf32> to vector<4x256xf32>
    %c16_166 = arith.constant 16 : index
    %c0_167 = arith.constant 0 : index
    %187 = vector.load %arg9[%c16_166, %c0_167] : memref<36x256xf32, #tpu.memory_space<vmem>>, vector<4x256xf32>
    tpu.vector_store %arg9[%c16_166, %c0_167], %186 {strides = array<i32>} : memref<36x256xf32, #tpu.memory_space<vmem>>, vector<4x256xf32>,
    %c0_168 = arith.constant 0 : index
    %c0_169 = arith.constant 0 : index
    %c18_170 = arith.constant 18 : index
    %188 = vector.load %arg8[%c0_168, %c0_169, %c18_170] : memref<2x4x290xf32, #tpu.memory_space<vmem>>, vector<1x4x256xf32>
    %189 = vector.shape_cast %188 : vector<1x4x256xf32> to vector<4x256xf32>
    %cst_171 = arith.constant 0.000000e+00 : f32
    %190 = vector.broadcast %cst_171 : f32 to vector<4x256xf32>
    %191 = arith.select %20, %189, %190 : vector<4x256xi1>, vector<4x256xf32>
    %c20_172 = arith.constant 20 : index
    %c0_173 = arith.constant 0 : index
    %192 = vector.load %arg9[%c20_172, %c0_173] : memref<36x256xf32, #tpu.memory_space<vmem>>, vector<4x256xf32>
    tpu.vector_store %arg9[%c20_172, %c0_173], %191 {strides = array<i32>} : memref<36x256xf32, #tpu.memory_space<vmem>>, vector<4x256xf32>,
    %c0_174 = arith.constant 0 : index
    %c0_175 = arith.constant 0 : index
    %c32_176 = arith.constant 32 : index
    %193 = vector.load %arg8[%c0_174, %c0_175, %c32_176] : memref<2x4x290xf32, #tpu.memory_space<vmem>>, vector<1x4x256xf32>
    %194 = vector.shape_cast %193 : vector<1x4x256xf32> to vector<4x256xf32>
    %cst_177 = arith.constant 0.000000e+00 : f32
    %195 = vector.broadcast %cst_177 : f32 to vector<4x256xf32>
    %196 = arith.select %18, %194, %195 : vector<4x256xi1>, vector<4x256xf32>
    %c24_178 = arith.constant 24 : index
    %c0_179 = arith.constant 0 : index
    %197 = vector.load %arg9[%c24_178, %c0_179] : memref<36x256xf32, #tpu.memory_space<vmem>>, vector<4x256xf32>
    tpu.vector_store %arg9[%c24_178, %c0_179], %196 {strides = array<i32>} : memref<36x256xf32, #tpu.memory_space<vmem>>, vector<4x256xf32>,
    %c0_180 = arith.constant 0 : index
    %c0_181 = arith.constant 0 : index
    %c33_182 = arith.constant 33 : index
    %198 = vector.load %arg8[%c0_180, %c0_181, %c33_182] : memref<2x4x290xf32, #tpu.memory_space<vmem>>, vector<1x4x256xf32>
    %199 = vector.shape_cast %198 : vector<1x4x256xf32> to vector<4x256xf32>
    %c28_183 = arith.constant 28 : index
    %c0_184 = arith.constant 0 : index
    %200 = vector.load %arg9[%c28_183, %c0_184] : memref<36x256xf32, #tpu.memory_space<vmem>>, vector<4x256xf32>
    tpu.vector_store %arg9[%c28_183, %c0_184], %199 {strides = array<i32>} : memref<36x256xf32, #tpu.memory_space<vmem>>, vector<4x256xf32>,
    %c0_185 = arith.constant 0 : index
    %c0_186 = arith.constant 0 : index
    %c34_187 = arith.constant 34 : index
    %201 = vector.load %arg8[%c0_185, %c0_186, %c34_187] : memref<2x4x290xf32, #tpu.memory_space<vmem>>, vector<1x4x256xf32>
    %202 = vector.shape_cast %201 : vector<1x4x256xf32> to vector<4x256xf32>
    %cst_188 = arith.constant 0.000000e+00 : f32
    %203 = vector.broadcast %cst_188 : f32 to vector<4x256xf32>
    %204 = arith.select %20, %202, %203 : vector<4x256xi1>, vector<4x256xf32>
    %c32_189 = arith.constant 32 : index
    %c0_190 = arith.constant 0 : index
    %205 = vector.load %arg9[%c32_189, %c0_190] : memref<36x256xf32, #tpu.memory_space<vmem>>, vector<4x256xf32>
    tpu.vector_store %arg9[%c32_189, %c0_190], %204 {strides = array<i32>} : memref<36x256xf32, #tpu.memory_space<vmem>>, vector<4x256xf32>,
    %c0_191 = arith.constant 0 : index
    %c0_192 = arith.constant 0 : index
    %206 = vector.load %arg9[%c0_191, %c0_192] : memref<36x256xf32, #tpu.memory_space<vmem>>, vector<36x256xf32>
    %cst_193 = arith.constant dense<0.000000e+00> : vector<4x256xf32>
    %207 = tpu.matmul %166, %206, %cst_193 {dimension_numbers = #tpu.dot_dimension_numbers<[1], [0], [0], [1], [0, 0, 1, 1], [], []>, precision = #tpu.contract_precision<fp32>} : vector<4x36xf32>, vector<36x256xf32>, vector<4x256xf32> -> vector<4x256xf32>
    %c1_194 = arith.constant 1 : index
    %c0_195 = arith.constant 0 : index
    %c0_196 = arith.constant 0 : index
    %208 = vector.load %arg8[%c1_194, %c0_195, %c0_196] : memref<2x4x290xf32, #tpu.memory_space<vmem>>, vector<1x4x256xf32>
    %209 = vector.shape_cast %208 : vector<1x4x256xf32> to vector<4x256xf32>
    %cst_197 = arith.constant 0.000000e+00 : f32
    %210 = vector.broadcast %cst_197 : f32 to vector<4x256xf32>
    %211 = arith.select %18, %209, %210 : vector<4x256xi1>, vector<4x256xf32>
    %c0_198 = arith.constant 0 : index
    %c0_199 = arith.constant 0 : index
    %212 = vector.load %arg9[%c0_198, %c0_199] : memref<36x256xf32, #tpu.memory_space<vmem>>, vector<4x256xf32>
    tpu.vector_store %arg9[%c0_198, %c0_199], %211 {strides = array<i32>} : memref<36x256xf32, #tpu.memory_space<vmem>>, vector<4x256xf32>,
    %c1_200 = arith.constant 1 : index
    %c0_201 = arith.constant 0 : index
    %c1_202 = arith.constant 1 : index
    %213 = vector.load %arg8[%c1_200, %c0_201, %c1_202] : memref<2x4x290xf32, #tpu.memory_space<vmem>>, vector<1x4x256xf32>
    %214 = vector.shape_cast %213 : vector<1x4x256xf32> to vector<4x256xf32>
    %c4_203 = arith.constant 4 : index
    %c0_204 = arith.constant 0 : index
    %215 = vector.load %arg9[%c4_203, %c0_204] : memref<36x256xf32, #tpu.memory_space<vmem>>, vector<4x256xf32>
    tpu.vector_store %arg9[%c4_203, %c0_204], %214 {strides = array<i32>} : memref<36x256xf32, #tpu.memory_space<vmem>>, vector<4x256xf32>,
    %c1_205 = arith.constant 1 : index
    %c0_206 = arith.constant 0 : index
    %c2_207 = arith.constant 2 : index
    %216 = vector.load %arg8[%c1_205, %c0_206, %c2_207] : memref<2x4x290xf32, #tpu.memory_space<vmem>>, vector<1x4x256xf32>
    %217 = vector.shape_cast %216 : vector<1x4x256xf32> to vector<4x256xf32>
    %cst_208 = arith.constant 0.000000e+00 : f32
    %218 = vector.broadcast %cst_208 : f32 to vector<4x256xf32>
    %219 = arith.select %20, %217, %218 : vector<4x256xi1>, vector<4x256xf32>
    %c8_209 = arith.constant 8 : index
    %c0_210 = arith.constant 0 : index
    %220 = vector.load %arg9[%c8_209, %c0_210] : memref<36x256xf32, #tpu.memory_space<vmem>>, vector<4x256xf32>
    tpu.vector_store %arg9[%c8_209, %c0_210], %219 {strides = array<i32>} : memref<36x256xf32, #tpu.memory_space<vmem>>, vector<4x256xf32>,
    %c1_211 = arith.constant 1 : index
    %c0_212 = arith.constant 0 : index
    %c16_213 = arith.constant 16 : index
    %221 = vector.load %arg8[%c1_211, %c0_212, %c16_213] : memref<2x4x290xf32, #tpu.memory_space<vmem>>, vector<1x4x256xf32>
    %222 = vector.shape_cast %221 : vector<1x4x256xf32> to vector<4x256xf32>
    %cst_214 = arith.constant 0.000000e+00 : f32
    %223 = vector.broadcast %cst_214 : f32 to vector<4x256xf32>
    %224 = arith.select %18, %222, %223 : vector<4x256xi1>, vector<4x256xf32>
    %c12_215 = arith.constant 12 : index
    %c0_216 = arith.constant 0 : index
    %225 = vector.load %arg9[%c12_215, %c0_216] : memref<36x256xf32, #tpu.memory_space<vmem>>, vector<4x256xf32>
    tpu.vector_store %arg9[%c12_215, %c0_216], %224 {strides = array<i32>} : memref<36x256xf32, #tpu.memory_space<vmem>>, vector<4x256xf32>,
    %c1_217 = arith.constant 1 : index
    %c0_218 = arith.constant 0 : index
    %c17_219 = arith.constant 17 : index
    %226 = vector.load %arg8[%c1_217, %c0_218, %c17_219] : memref<2x4x290xf32, #tpu.memory_space<vmem>>, vector<1x4x256xf32>
    %227 = vector.shape_cast %226 : vector<1x4x256xf32> to vector<4x256xf32>
    %c16_220 = arith.constant 16 : index
    %c0_221 = arith.constant 0 : index
    %228 = vector.load %arg9[%c16_220, %c0_221] : memref<36x256xf32, #tpu.memory_space<vmem>>, vector<4x256xf32>
    tpu.vector_store %arg9[%c16_220, %c0_221], %227 {strides = array<i32>} : memref<36x256xf32, #tpu.memory_space<vmem>>, vector<4x256xf32>,
    %c1_222 = arith.constant 1 : index
    %c0_223 = arith.constant 0 : index
    %c18_224 = arith.constant 18 : index
    %229 = vector.load %arg8[%c1_222, %c0_223, %c18_224] : memref<2x4x290xf32, #tpu.memory_space<vmem>>, vector<1x4x256xf32>
    %230 = vector.shape_cast %229 : vector<1x4x256xf32> to vector<4x256xf32>
    %cst_225 = arith.constant 0.000000e+00 : f32
    %231 = vector.broadcast %cst_225 : f32 to vector<4x256xf32>
    %232 = arith.select %20, %230, %231 : vector<4x256xi1>, vector<4x256xf32>
    %c20_226 = arith.constant 20 : index
    %c0_227 = arith.constant 0 : index
    %233 = vector.load %arg9[%c20_226, %c0_227] : memref<36x256xf32, #tpu.memory_space<vmem>>, vector<4x256xf32>
    tpu.vector_store %arg9[%c20_226, %c0_227], %232 {strides = array<i32>} : memref<36x256xf32, #tpu.memory_space<vmem>>, vector<4x256xf32>,
    %c1_228 = arith.constant 1 : index
    %c0_229 = arith.constant 0 : index
    %c32_230 = arith.constant 32 : index
    %234 = vector.load %arg8[%c1_228, %c0_229, %c32_230] : memref<2x4x290xf32, #tpu.memory_space<vmem>>, vector<1x4x256xf32>
    %235 = vector.shape_cast %234 : vector<1x4x256xf32> to vector<4x256xf32>
    %cst_231 = arith.constant 0.000000e+00 : f32
    %236 = vector.broadcast %cst_231 : f32 to vector<4x256xf32>
    %237 = arith.select %18, %235, %236 : vector<4x256xi1>, vector<4x256xf32>
    %c24_232 = arith.constant 24 : index
    %c0_233 = arith.constant 0 : index
    %238 = vector.load %arg9[%c24_232, %c0_233] : memref<36x256xf32, #tpu.memory_space<vmem>>, vector<4x256xf32>
    tpu.vector_store %arg9[%c24_232, %c0_233], %237 {strides = array<i32>} : memref<36x256xf32, #tpu.memory_space<vmem>>, vector<4x256xf32>,
    %c1_234 = arith.constant 1 : index
    %c0_235 = arith.constant 0 : index
    %c33_236 = arith.constant 33 : index
    %239 = vector.load %arg8[%c1_234, %c0_235, %c33_236] : memref<2x4x290xf32, #tpu.memory_space<vmem>>, vector<1x4x256xf32>
    %240 = vector.shape_cast %239 : vector<1x4x256xf32> to vector<4x256xf32>
    %c28_237 = arith.constant 28 : index
    %c0_238 = arith.constant 0 : index
    %241 = vector.load %arg9[%c28_237, %c0_238] : memref<36x256xf32, #tpu.memory_space<vmem>>, vector<4x256xf32>
    tpu.vector_store %arg9[%c28_237, %c0_238], %240 {strides = array<i32>} : memref<36x256xf32, #tpu.memory_space<vmem>>, vector<4x256xf32>,
    %c1_239 = arith.constant 1 : index
    %c0_240 = arith.constant 0 : index
    %c34_241 = arith.constant 34 : index
    %242 = vector.load %arg8[%c1_239, %c0_240, %c34_241] : memref<2x4x290xf32, #tpu.memory_space<vmem>>, vector<1x4x256xf32>
    %243 = vector.shape_cast %242 : vector<1x4x256xf32> to vector<4x256xf32>
    %cst_242 = arith.constant 0.000000e+00 : f32
    %244 = vector.broadcast %cst_242 : f32 to vector<4x256xf32>
    %245 = arith.select %20, %243, %244 : vector<4x256xi1>, vector<4x256xf32>
    %c32_243 = arith.constant 32 : index
    %c0_244 = arith.constant 0 : index
    %246 = vector.load %arg9[%c32_243, %c0_244] : memref<36x256xf32, #tpu.memory_space<vmem>>, vector<4x256xf32>
    tpu.vector_store %arg9[%c32_243, %c0_244], %245 {strides = array<i32>} : memref<36x256xf32, #tpu.memory_space<vmem>>, vector<4x256xf32>,
    %c0_245 = arith.constant 0 : index
    %c0_246 = arith.constant 0 : index
    %247 = vector.load %arg9[%c0_245, %c0_246] : memref<36x256xf32, #tpu.memory_space<vmem>>, vector<36x256xf32>
    %cst_247 = arith.constant dense<0.000000e+00> : vector<4x256xf32>
    %248 = tpu.matmul %166, %247, %cst_247 {dimension_numbers = #tpu.dot_dimension_numbers<[1], [0], [0], [1], [0, 0, 1, 1], [], []>, precision = #tpu.contract_precision<fp32>} : vector<4x36xf32>, vector<36x256xf32>, vector<4x256xf32> -> vector<4x256xf32>
    %cst_248 = arith.constant 0.000000e+00 : f32
    %249 = vector.broadcast %cst_248 : f32 to vector<4x1xf32>
    %cst_249 = arith.constant 0.000000e+00 : f32
    %250 = vector.broadcast %cst_249 : f32 to vector<4x1xf32>
    %cst_250 = arith.constant dense<0.000000e+00> : vector<4xf32>
    %251 = vector.multi_reduction <add>, %207, %cst_250 [1] : vector<4x256xf32> to vector<4xf32>
    %252 = vector.shape_cast %251 : vector<4xf32> to vector<4x1xf32>
    %253 = arith.addf %249, %252 : vector<4x1xf32>
    %254 = arith.mulf %207, %207 : vector<4x256xf32>
    %cst_251 = arith.constant dense<0.000000e+00> : vector<4xf32>
    %255 = vector.multi_reduction <add>, %254, %cst_251 [1] : vector<4x256xf32> to vector<4xf32>
    %256 = vector.shape_cast %255 : vector<4xf32> to vector<4x1xf32>
    %257 = arith.addf %250, %256 : vector<4x1xf32>
    %cst_252 = arith.constant dense<0.000000e+00> : vector<4xf32>
    %258 = vector.multi_reduction <add>, %248, %cst_252 [1] : vector<4x256xf32> to vector<4xf32>
    %259 = vector.shape_cast %258 : vector<4xf32> to vector<4x1xf32>
    %260 = arith.addf %253, %259 : vector<4x1xf32>
    %261 = arith.mulf %248, %248 : vector<4x256xf32>
    %cst_253 = arith.constant dense<0.000000e+00> : vector<4xf32>
    %262 = vector.multi_reduction <add>, %261, %cst_253 [1] : vector<4x256xf32> to vector<4xf32>
    %263 = vector.shape_cast %262 : vector<4xf32> to vector<4x1xf32>
    %264 = arith.addf %257, %263 : vector<4x1xf32>
    %cst_254 = arith.constant 0.001953125 : f32
    %265 = vector.broadcast %cst_254 : f32 to vector<4x1xf32>
    %266 = arith.mulf %260, %265 : vector<4x1xf32>
    %cst_255 = arith.constant 0.001953125 : f32
    %267 = vector.broadcast %cst_255 : f32 to vector<4x1xf32>
    %268 = arith.mulf %264, %267 : vector<4x1xf32>
    %269 = arith.mulf %266, %266 : vector<4x1xf32>
    %270 = arith.subf %268, %269 : vector<4x1xf32>
    %cst_256 = arith.constant 9.99999974E-6 : f32
    %271 = vector.broadcast %cst_256 : f32 to vector<4x1xf32>
    %272 = arith.addf %270, %271 : vector<4x1xf32>
    %273 = math.rsqrt %272 : vector<4x1xf32>
    %c0_257 = arith.constant 0 : index
    %c0_258 = arith.constant 0 : index
    %274 = vector.load %arg5[%c0_257, %c0_258] : memref<4x1xf32, #tpu.memory_space<vmem>>, vector<4x1xf32>
    %275 = arith.mulf %274, %273 : vector<4x1xf32>
    %c0_259 = arith.constant 0 : index
    %c0_260 = arith.constant 0 : index
    %276 = vector.load %arg6[%c0_259, %c0_260] : memref<4x1xf32, #tpu.memory_space<vmem>>, vector<4x1xf32>
    %277 = arith.mulf %266, %275 : vector<4x1xf32>
    %278 = arith.subf %276, %277 : vector<4x1xf32>
    %279 = vector.broadcast %275 : vector<4x1xf32> to vector<4x256xf32>
    %280 = arith.mulf %207, %279 : vector<4x256xf32>
    %281 = vector.broadcast %278 : vector<4x1xf32> to vector<4x256xf32>
    %282 = arith.addf %280, %281 : vector<4x256xf32>
    %283 = vector.broadcast %275 : vector<4x1xf32> to vector<4x256xf32>
    %284 = arith.mulf %248, %283 : vector<4x256xf32>
    %285 = vector.broadcast %278 : vector<4x1xf32> to vector<4x256xf32>
    %286 = arith.addf %284, %285 : vector<4x256xf32>
    %c0_261 = arith.constant 0 : index
    %c0_262 = arith.constant 0 : index
    %c0_263 = arith.constant 0 : index
    %287 = vector.load %arg0[%c0_261, %c0_262, %c0_263] : memref<2x4x256xf32, #tpu.memory_space<vmem>>, vector<1x4x256xf32>
    %288 = vector.shape_cast %287 : vector<1x4x256xf32> to vector<4x256xf32>
    %289 = arith.addf %288, %282 : vector<4x256xf32>
    %c0_264 = arith.constant 0 : index
    %c0_265 = arith.constant 0 : index
    %c0_266 = arith.constant 0 : index
    %290 = vector.load %arg7[%c0_264, %c0_265, %c0_266] : memref<2x4x256xf32, #tpu.memory_space<vmem>>, vector<1x4x256xf32>
    %291 = vector.shape_cast %290 : vector<1x4x256xf32> to vector<4x256xf32>
    %292 = vector.shape_cast %289 : vector<4x256xf32> to vector<1x4x256xf32>
    tpu.vector_store %arg7[%c0_264, %c0_265, %c0_266], %292 {strides = array<i32>} : memref<2x4x256xf32, #tpu.memory_space<vmem>>, vector<1x4x256xf32>,
    %c1_267 = arith.constant 1 : index
    %c0_268 = arith.constant 0 : index
    %c0_269 = arith.constant 0 : index
    %293 = vector.load %arg0[%c1_267, %c0_268, %c0_269] : memref<2x4x256xf32, #tpu.memory_space<vmem>>, vector<1x4x256xf32>
    %294 = vector.shape_cast %293 : vector<1x4x256xf32> to vector<4x256xf32>
    %295 = arith.addf %294, %286 : vector<4x256xf32>
    %c1_270 = arith.constant 1 : index
    %c0_271 = arith.constant 0 : index
    %c0_272 = arith.constant 0 : index
    %296 = vector.load %arg7[%c1_270, %c0_271, %c0_272] : memref<2x4x256xf32, #tpu.memory_space<vmem>>, vector<1x4x256xf32>
    %297 = vector.shape_cast %296 : vector<1x4x256xf32> to vector<4x256xf32>
    %298 = vector.shape_cast %295 : vector<4x256xf32> to vector<1x4x256xf32>
    tpu.vector_store %arg7[%c1_270, %c0_271, %c0_272], %298 {strides = array<i32>} : memref<2x4x256xf32, #tpu.memory_space<vmem>>, vector<1x4x256xf32>,
    return
  }
}

</mosaic_0001>

<bundles_post_ra>
// kernel: tpu_custom_call.1
= control target key start
LH: loop header
LB: loop body
LE: loop exit
PB: predicated region body
PF: predicated region fallthrough
CT: control target
= control target key end

     0   :  { %s3584_s26 = smov 17   ;;  %vm58_vm0 = vcmask 134144   ;;  %vm61_vm1 = vcmask 273544   ;;  %v3585_v2 = vmov 0.0   ;;  %s4926_s0 = inlined_call_operand.vmem [shape: f32[2,4,256], index: 0, kind: input, shape index: {}]   ;;  %s4927_s1 = inlined_call_operand.vmem [shape: f32[4,36], index: 1, kind: input, shape index: {}]   ;;  %s4928_s2 = inlined_call_operand.vmem [shape: f32[4,1], index: 2, kind: input, shape index: {}]   ;;  %s4929_s3 = inlined_call_operand.vmem [shape: f32[4,1], index: 3, kind: input, shape index: {}]   ;;  %s4930_s4 = inlined_call_operand.vmem [shape: f32[4,36], index: 4, kind: input, shape index: {}]   ;;  %s4931_s5 = inlined_call_operand.vmem [shape: f32[4,1], index: 5, kind: input, shape index: {}]   ;;  %s4932_s6 = inlined_call_operand.vmem [shape: f32[4,1], index: 6, kind: input, shape index: {}]   ;;  %s4933_s7 = inlined_call_operand.hbm [shape: f32[2,4,256], index: 7, kind: output, shape index: {}]  }
   0x1   :  { %v64_v0 = vld [vmem:[%s4926_s0] sm:$0xff]  ;;  %v3291_v1 = vld [vmem:[%s4926_s0 + $0x8] sm:$0xff]  ;;  %59 = vst.msk [vmem:[#allocation2] sm:$0xf] %vm58_vm0, %v3585_v2  ;;  %60 = vst.msk [vmem:[#allocation2 + $0xc] sm:$0xf] %vm58_vm0, %v3585_v2  ;;  %362 = vmatprep.mubr.f32.mxu0 %v3585_v2  ;;  %1115 = vmatprep.mubr.f32.mxu1 %v3585_v2 }
   0x2   :  { %68 = vrot.lane.b32.xlu0 %v64_v0, %s3584_s26  ;;  %62 = vst.msk [vmem:[#allocation2 + $0x8] sm:$0xf] %vm61_vm1, %v3585_v2  ;;  %63 = vst.msk [vmem:[#allocation2 + $0x14] sm:$0xf] %vm61_vm1, %v3585_v2 }
   0x3   :  { %12 = vsyncpa [#allocation5], 0  ;;  %v27_v3 = vlaneseq  ;;  %vm75_vm2 = vcmask 1043592   ;;  %vm76_vm3 = vcmask 1047556   ;;  %vm71_vm4 = vcmask 138240   ;;  %s3586_s29 = smov 112  }
   0x4   :  { %vm3656_vm5 = vmor %vm76_vm3, %vm75_vm2  ;;  %s3587_s30 = smov 126   ;;  %s3588_s8 = smov 96   ;;  %vm111_vm8 = vcmask 1039360   ;;  %vm240_vm9 = vcmask 777216   ;;  %vm219_vm10 = vcmask 785408   ;;  %vm175_vm11 = vcmask 908288  }
   0x5   :  { %v3654_v5 = vand.u32 127, %v27_v3  ;;  %s3589_s9 = smov 110   ;;  %s3590_s10 = smov 111   ;;  %vm4934_vm12 = vcmask 293888   ;;  %vm258_vm13 = vcmask 769024   ;;  %vm149_vm1 = vcmask 916480  }
   0x6   :  { %81 = vrot.lane.b32.xlu0 %v3291_v1, %s3584_s26  ;;  %s3591_s11 = smov 94   ;;  %s3592_s12 = smov 127   ;;  %vm129_vm2 = vcmask 1031168   ;;  %vm281_vm3 = vcmask 1043456  }
   0x7   :  { %v3665_v10 = vadd.s32 128, %v3654_v5  ;;  %v34_v12 = vand.u32 15, %v3654_v5  ;;  %s3593_s13 = smov 95   ;;  %s3595_s24 = smov [#allocation4]  }
   0x8   :  { %s3280_s25 = sshll.u32 %s3595_s24, 4  ;;  %s3281_s25 = int_to_ptr.vmem [resolvable:$true] %s3280_s25 }
   0x9   :  { %v41_v14 = vand.u32 15, %v3665_v10  ;;  %vm3675_vm6 = vcmp.ge.s32.totalorder %v34_v12, 1  ;;  %vm3838_vm14 = vcmp.le.s32.totalorder %v34_v12, 14  ;;  %p3565_p1 = scmp.lt.s32.totalorder %s3281_s25, %s3281_s25 }
   0xb   :  { %vm3685_vm7 = vcmp.ge.s32.totalorder %v41_v14, 1  ;;  %vm3853_vm15 = vcmp.le.s32.totalorder %v41_v14, 14 }
  0x74   :  { %v69_v4 = vpop.permute.xlu0 %68 }
  0x75   :  { %v70_v7 = vrot.slane %v69_v4, 4 }
  0x77   :  { %v72_v8 = vsel %vm71_vm4, %v70_v7, %v69_v4  ;;  %79 = vst.msk [vmem:[#allocation2 + $0x8] sm:$0xf] %vm58_vm0, %v70_v7 }
  0x78   :  { %78 = vst.msk [vmem:[#allocation2] sm:$0xff] %vm3656_vm5, %v72_v8  ;;  %v82_v9 = vpop.permute.xlu0 %81 }
  0x79   :  { %v83_v11 = vrot.slane %v82_v9, 4 }
  0x7b   :  { %v84_v13 = vsel %vm71_vm4, %v83_v11, %v82_v9  ;;  %89 = vst.msk [vmem:[#allocation2 + $0x14] sm:$0xf] %vm58_vm0, %v83_v11 }
  0x7c   :  { %88 = vst.msk [vmem:[#allocation2 + $0xc] sm:$0xff] %vm3656_vm5, %v84_v13 }
  0x7e   :  { %v139_v15 = vld [vmem:[#allocation2 + $0x8] sm:$0xf] }
  0x7f   :  { %v119_v16 = vld [vmem:[#allocation2 + $0x8] sm:$0xf]  ;;  %v91_v18 = vld [vmem:[#allocation2] sm:$0xff]  ;;  %147 = vrot.lane.b32.xlu1 %v139_v15, %s3586_s29 }
  0x80   :  { %127 = vrot.lane.b32.xlu0 %v119_v16, %s3587_s30  ;;  %v3681_v19 = vcombine.high %v91_v18, %v91_v18  ;;  %v95_v21 = vsel %vm3675_vm6, %v91_v18, 0.0  ;;  %v209_v22 = vld [vmem:[#allocation2 + $0x8] sm:$0xf]  ;;  %v103_v36 = vcombine.low %v91_v18, %v91_v18 }
  0x81   :  { %v183_v23 = vld [vmem:[#allocation2 + $0x8] sm:$0xf]  ;;  %97 = vst [vmem:[#allocation3] sm:$0xf] %v95_v21 }
  0x82   :  { %v96_v24 = vsel %vm3685_vm7, %v3681_v19, 0.0  ;;  %v903_v25 = vld [vmem:[#allocation2 + $0x14] sm:$0xf]  ;;  %v165_v26 = vld [vmem:[#allocation2 + $0x8] sm:$0xf] }
  0x83   :  { %217 = vrot.lane.b32.xlu1 %v209_v22, %s3588_s8  ;;  %98 = vst [vmem:[#allocation3 + $0x8] sm:$0xf] %v96_v24  ;;  %v884_v27 = vld [vmem:[#allocation2 + $0x14] sm:$0xf]  ;;  %v248_v29 = vld [vmem:[#allocation2 + $0x8] sm:$0xf] }
  0x84   :  { %191 = vrot.lane.b32.xlu0 %v183_v23, %s3589_s9  ;;  %v945_v28 = vld [vmem:[#allocation2 + $0x14] sm:$0xf]  ;;  %v3704_v31 = vld [vmem:[#allocation2 + $0xc] sm:$0xff]  ;;  %v3543_v33 = vld [vmem:[#allocation2 + $0x8] ss:$0 sps:$4 sm:$0xff]  }
  0x85   :  { %v970_v30 = vld [vmem:[#allocation2 + $0x14] sm:$0xf]  ;;  %v3544_v34 = vld [vmem:[#allocation2 + $0x8] ss:$0 sps:$4 sm:$0xff]   ;;  %v859_v37 = vcombine.high %v3704_v31, %v3704_v31  ;;  %v869_v39 = vcombine.low %v3704_v31, %v3704_v31  ;;  %v90_v22 = vld [vmem:[%s4927_s1] sm:$0xf] }
  0x86   :  { %v928_v32 = vld [vmem:[#allocation2 + $0x14] sm:$0xf] }
  0x87   :  { %173 = vrot.lane.b32.xlu1 %v165_v26, %s3590_s10  ;;  %v3545_v35 = vld [vmem:[#allocation2 + $0x14] ss:$0 sps:$4 sm:$0xff]   ;;  %v862_v7 = vsel %vm3685_vm7, %v859_v37, 0.0 }
  0x88   :  { %911 = vrot.lane.b32.xlu0 %v903_v25, %s3586_s29  ;;  %v3546_v38 = vld [vmem:[#allocation2 + $0x14] ss:$0 sps:$4 sm:$0xff]  }
  0x89   :  { %v1007_v40 = vld [vmem:[#allocation2 + $0x14] sm:$0xf] }
  0x8b   :  { %892 = vrot.lane.b32.xlu1 %v884_v27, %s3587_s30 }
  0x8c   :  { %953 = vrot.lane.b32.xlu0 %v945_v28, %s3589_s9  ;;  %v861_v28 = vsel %vm3675_vm6, %v3704_v31, 0.0 }
  0x8f   :  { %256 = vrot.lane.b32.xlu1 %v248_v29, %s3591_s11  ;;  %v279_v29 = vsel %vm4934_vm12, %v90_v22, 0  ;;  %vm193_vm12 = vcmask 900096  }
  0x90   :  { %143 = vrot.lane.b32.xlu0 %v91_v18, %s3586_s29 }
  0x93   :  { %978 = vrot.lane.b32.xlu1 %v970_v30, %s3588_s8 }
  0x94   :  { %213 = vrot.lane.b32.xlu0 %v91_v18, %s3588_s8 }
  0x97   :  { %936 = vrot.lane.b32.xlu1 %v928_v32, %s3590_s10 }
  0x98   :  { %873 = vrot.lane.b32.xlu0 %v3704_v31, %s3592_s12 }
  0x9b   :  { %107 = vrot.lane.b32.xlu1 %v91_v18, %s3592_s12 }
  0x9c   :  { %888 = vrot.lane.b32.xlu0 %v3704_v31, %s3587_s30 }
  0x9f   :  { %123 = vrot.lane.b32.xlu1 %v91_v18, %s3587_s30 }
  0xa0   :  { %974 = vrot.lane.b32.xlu0 %v3704_v31, %s3588_s8 }
  0xa3   :  { %187 = vrot.lane.b32.xlu1 %v91_v18, %s3589_s9 }
  0xa4   :  { %109 = vrot.lane.b32.xlu0 %v3543_v33, %s3592_s12  ;;  %v3820_v33 = vand.u32 4294901760, %v279_v29 }
  0xa7   :  { %236 = vrot.lane.b32.xlu1 %v91_v18, %s3593_s13 }
  0xa8   :  { %238 = vrot.lane.b32.xlu0 %v3544_v34, %s3593_s13 }
  0xab   :  { %169 = vrot.lane.b32.xlu1 %v91_v18, %s3590_s10 }
  0xac   :  { %998 = vrot.lane.b32.xlu0 %v3545_v35, %s3593_s13 }
  0xaf   :  { %907 = vrot.lane.b32.xlu1 %v3704_v31, %s3586_s29 }
  0xb0   :  { %105 = vrot.lane.b32.xlu0 %v103_v36, %s3592_s12 }
  0xb3   :  { %252 = vrot.lane.b32.xlu1 %v91_v18, %s3591_s11 }
  0xb4   :  { %215 = vrot.lane.b32.xlu0 %v3681_v19, %s3588_s8 }
  0xb7   :  { %949 = vrot.lane.b32.xlu1 %v3704_v31, %s3589_s9 }
  0xb8   :  { %171 = vrot.lane.b32.xlu0 %v3681_v19, %s3590_s10 }
  0xbb   :  { %996 = vrot.lane.b32.xlu1 %v3704_v31, %s3593_s13 }
  0xbc   :  { %234 = vrot.lane.b32.xlu0 %v103_v36, %s3593_s13 }
  0xbf   :  { %932 = vrot.lane.b32.xlu1 %v3704_v31, %s3590_s10 }
  0xc0   :  { %890 = vrot.lane.b32.xlu0 %v859_v37, %s3587_s30 }
  0xc3   :  { %875 = vrot.lane.b32.xlu1 %v3546_v38, %s3592_s12 }
  0xc4   :  { %254 = vrot.lane.b32.xlu0 %v3681_v19, %s3591_s11 }
  0xc7   :  { %145 = vrot.lane.b32.xlu1 %v3681_v19, %s3586_s29 }
  0xc8   :  { %871 = vrot.lane.b32.xlu0 %v869_v39, %s3592_s12 }
  0xcb   :  { %125 = vrot.lane.b32.xlu1 %v3681_v19, %s3587_s30 }
  0xcc   :  { %976 = vrot.lane.b32.xlu0 %v859_v37, %s3588_s8 }
  0xcf   :  { %189 = vrot.lane.b32.xlu1 %v3681_v19, %s3589_s9 }
  0xd0   :  { %934 = vrot.lane.b32.xlu0 %v859_v37, %s3590_s10 }
  0xd3   :  { %909 = vrot.lane.b32.xlu1 %v859_v37, %s3586_s29 }
  0xd4   :  { %994 = vrot.lane.b32.xlu0 %v869_v39, %s3593_s13  ;;  %v3833_v39 = vsub.f32 %v279_v29, %v3820_v33 }
  0xd7   :  { %951 = vrot.lane.b32.xlu1 %v859_v37, %s3589_s9 }
  0xd8   :  { %1015 = vrot.lane.b32.xlu0 %v1007_v40, %s3591_s11 }
  0xdb   :  { %1013 = vrot.lane.b32.xlu1 %v859_v37, %s3591_s11 }
  0xdf   :  { %1011 = vrot.lane.b32.xlu1 %v3704_v31, %s3591_s11 }
  0xf1   :  { %v3760_v41 = vpop.permute.xlu1 %147 }
  0xf2   :  { %v3762_v42 = vpop.permute.xlu0 %127 }
  0xf5   :  { %v218_v43 = vpop.permute.xlu1 %217 }
  0xf6   :  { %v3764_v44 = vpop.permute.xlu0 %191 }
  0xf9   :  { %v174_v45 = vpop.permute.xlu1 %173 }
  0xfa   :  { %v3766_v46 = vpop.permute.xlu0 %911 }
  0xfd   :  { %v3768_v47 = vpop.permute.xlu1 %892 }
  0xfe   :  { %v3770_v48 = vpop.permute.xlu0 %953 }
 0x101   :  { %v3772_v49 = vpop.permute.xlu1 %256 }
 0x102   :  { %v3774_v50 = vpop.permute.xlu0 %143 }
 0x105   :  { %v3776_v51 = vpop.permute.xlu1 %978 }
 0x106   :  { %v214_v52 = vpop.permute.xlu0 %213 }
 0x109   :  { %v3778_v53 = vpop.permute.xlu1 %936 }
 0x10a   :  { %v3780_v54 = vpop.permute.xlu0 %873 }
 0x10d   :  { %v108_v56 = vpop.permute.xlu1 %107 }
 0x10e   :  { %v3782_v55 = vpop.permute.xlu0 %888 }
 0x111   :  { %v3786_v58 = vpop.permute.xlu1 %123 }
 0x112   :  { %v3784_v57 = vpop.permute.xlu0 %974 }
 0x115   :  { %v3788_v60 = vpop.permute.xlu1 %187 }
 0x116   :  { %v110_v59 = vpop.permute.xlu0 %109 }
 0x117   :  { %v113_v61 = vsel %vm111_vm8, %v108_v56, %v110_v59 }
 0x118   :  { %117 = vst [vmem:[#allocation3 + $0x8] sm:$0xf0] %v113_v61  ;;  %v3849_v61 = vand.u32 4294901760, %v3833_v39 }
 0x119   :  { %v237_v63 = vpop.permute.xlu1 %236 }
 0x11a   :  { %v239_v62 = vpop.permute.xlu0 %238 }
 0x11b   :  { %v242_v0 = vsel %vm240_vm9, %v237_v63, %v239_v62 }
 0x11c   :  { %246 = vst [vmem:[#allocation3 + $0x38] sm:$0xf0] %v242_v0 }
 0x11d   :  { %v170_v3 = vpop.permute.xlu1 %169 }
 0x11e   :  { %v999_v1 = vpop.permute.xlu0 %998 }
 0x11f   :  { %v3792_v4 = vld [vmem:[#allocation3 + $0x8] sm:$0xff] }
 0x120   :  { %864 = vst [vmem:[#allocation3 + $0x8] sm:$0xf] %v862_v7  ;;  %v288_v38 = vand.u32 4294901760, %v3792_v4 }
 0x121   :  { %v3796_v8 = vpop.permute.xlu1 %907 }
 0x122   :  { %v106_v9 = vpop.permute.xlu0 %105 }
 0x123   :  { %v112_v11 = vsel %vm111_vm8, %v106_v9, %v108_v56  ;;  %v3845_v56 = vsub.f32 %v3792_v4, %v288_v38 }
 0x124   :  { %116 = vst [vmem:[#allocation3] sm:$0xf0] %v112_v11 }
 0x125   :  { %v253_v13 = vpop.permute.xlu1 %252 }
 0x126   :  { %v216_v15 = vpop.permute.xlu0 %215 }
 0x127   :  { %v220_v16 = vsel %vm219_vm10, %v214_v52, %v216_v15  ;;  %v221_v18 = vsel %vm219_vm10, %v216_v15, %v218_v43  ;;  %v366_v15 = vsub.f32 %v3833_v39, %v3849_v61 }
 0x128   :  { %v224_v19 = vsel %vm3675_vm6, %v220_v16, 0.0  ;;  %v225_v21 = vsel %vm3685_vm7, %v221_v18, 0.0 }
 0x129   :  { %226 = vst [vmem:[#allocation3 + $0x30] sm:$0xf] %v224_v19  ;;  %227 = vst [vmem:[#allocation3 + $0x38] sm:$0xf] %v225_v21  ;;  %v3808_v23 = vpop.permute.xlu1 %949 }
 0x12a   :  { %v172_v24 = vpop.permute.xlu0 %171 }
 0x12b   :  { %v176_v25 = vsel %vm175_vm11, %v170_v3, %v172_v24  ;;  %v177_v26 = vsel %vm175_vm11, %v172_v24, %v174_v45  ;;  %v3812_v27 = vld [vmem:[#allocation3] sm:$0xff] }
 0x12c   :  { %180 = vst [vmem:[#allocation3 + $0x20] sm:$0xf] %v176_v25  ;;  %181 = vst [vmem:[#allocation3 + $0x28] sm:$0xf] %v177_v26  ;;  %v290_v40 = vand.u32 4294901760, %v3812_v27 }
 0x12d   :  { %863 = vst [vmem:[#allocation3] sm:$0xf] %v861_v28  ;;  %v3818_v30 = vpop.permute.xlu1 %996 }
 0x12e   :  { %v235_v32 = vpop.permute.xlu0 %234  ;;  %v1001_v34 = vsel %vm240_vm9, %v3818_v30, %v999_v1  ;;  %v3872_v3 = vsub.f32 %v3812_v27, %v290_v40 }
 0x12f   :  { %v241_v35 = vsel %vm240_vm9, %v235_v32, %v237_v63 }
 0x130   :  { %v3825_v36 = vld [vmem:[#allocation3 + $0x38] sm:$0xff]  ;;  %245 = vst [vmem:[#allocation3 + $0x30] sm:$0xf0] %v241_v35 }
 0x131   :  { %1005 = vst [vmem:[#allocation3 + $0x38] sm:$0xf0] %v1001_v34  ;;  %v3827_v31 = vpop.permute.xlu1 %932  ;;  %v300_v59 = vand.u32 4294901760, %v3825_v36 }
 0x132   :  { %v3829_v37 = vpop.permute.xlu0 %890 }
 0x133   :  { %v3877_v9 = vsub.f32 %v3825_v36, %v300_v59 }
 0x135   :  { %v876_v45 = vpop.permute.xlu1 %875  ;;  %v4936_v29 = vand.u32 4294901760, %v3877_v9 }
 0x136   :  { %v255_v52 = vpop.permute.xlu0 %254  ;;  %v878_v12 = vsel %vm111_vm8, %v3780_v54, %v876_v45 }
 0x137   :  { %v259_v62 = vsel %vm258_vm13, %v253_v13, %v255_v52  ;;  %v260_v63 = vsel %vm258_vm13, %v255_v52, %v3772_v49  ;;  %v3862_v0 = vld [vmem:[#allocation3 + $0x30] sm:$0xff]  ;;  %882 = vst [vmem:[#allocation3 + $0x8] sm:$0xf0] %v878_v12  ;;  %v4942_v13 = vand.u32 4294901760, %v3845_v56 }
 0x138   :  { %v263_v1 = vsel %vm3838_vm14, %v259_v62, 0.0  ;;  %v264_v10 = vsel %vm3853_vm15, %v260_v63, 0.0  ;;  %v302_v14 = vand.u32 4294901760, %v3862_v0 }
 0x139   :  { %265 = vst [vmem:[#allocation3 + $0x40] sm:$0xf] %v263_v1  ;;  %266 = vst [vmem:[#allocation3 + $0x48] sm:$0xf] %v264_v10  ;;  %v146_v49 = vpop.permute.xlu1 %145 }
 0x13a   :  { %v872_v7 = vpop.permute.xlu0 %871  ;;  %v3882_v11 = vsub.f32 %v3862_v0, %v302_v14  ;;  %v150_v16 = vsel %vm149_vm1, %v3774_v50, %v146_v49  ;;  %v151_v18 = vsel %vm149_vm1, %v146_v49, %v3760_v41  ;;  %v4940_v50 = vand.u32 4294901760, %v3872_v3 }
 0x13b   :  { %v877_v19 = vsel %vm111_vm8, %v872_v7, %v3780_v54  ;;  %v154_v21 = vsel %vm3675_vm6, %v150_v16, 0.0  ;;  %v155_v22 = vsel %vm3685_vm7, %v151_v18, 0.0  ;;  %v3901_v41 = vsub.f32 %v3845_v56, %v4942_v13 }
 0x13c   :  { %881 = vst [vmem:[#allocation3] sm:$0xf0] %v877_v19  ;;  %v158_v24 = vrot.slane %v154_v21, 4  ;;  %v159_v25 = vrot.slane %v155_v22, 4  ;;  %v3903_v54 = vand.u32 4294901760, %v366_v15  ;;  %v4935_v32 = vand.u32 4294901760, %v3882_v11 }
 0x13d   :  { %v126_v26 = vpop.permute.xlu1 %125  ;;  %v3933_v7 = vsub.f32 %v3872_v3, %v4940_v50  ;;  %v895_v15 = vsel %vm129_vm2, %v3829_v37, %v3768_v47  ;;  %v378_v19 = vand.u32 4294901760, %v3901_v41  ;;  %v3944_v21 = vsub.f32 %v3877_v9, %v4936_v29 }
 0x13e   :  { %v977_v28 = vpop.permute.xlu0 %976  ;;  %162 = vst [vmem:[#allocation3 + $0x10] sm:$0xf0] %v158_v24  ;;  %163 = vst [vmem:[#allocation3 + $0x18] sm:$0xf0] %v159_v25  ;;  %v130_v34 = vsel %vm129_vm2, %v3786_v58, %v126_v26  ;;  %v131_v35 = vsel %vm129_vm2, %v126_v26, %v3762_v42  ;;  %v3915_v12 = vld [vmem:[#allocation3 + $0x8] sm:$0xff]  ;;  %v3954_v47 = vsub.f32 %v3882_v11, %v4935_v32 }
 0x13f   :  { %v980_v45 = vsel %vm219_vm10, %v3784_v57, %v977_v28  ;;  %v981_v52 = vsel %vm219_vm10, %v977_v28, %v3776_v51  ;;  %v134_v62 = vsel %vm3838_vm14, %v130_v34, 0.0  ;;  %v135_v63 = vsel %vm3853_vm15, %v131_v35, 0.0 }
 0x140   :  { %v984_v58 = vsel %vm3675_vm6, %v980_v45, 0.0  ;;  %v985_v42 = vsel %vm3685_vm7, %v981_v52, 0.0  ;;  %v276_v1 = vld [vmem:[#allocation3 + $0x48] sm:$0xf]  ;;  %v894_v57 = vsel %vm129_vm2, %v3782_v55, %v3829_v37  ;;  %136 = vst [vmem:[#allocation3 + $0x10] sm:$0xf] %v134_v62 }
 0x141   :  { %137 = vst [vmem:[#allocation3 + $0x18] sm:$0xf] %v135_v63  ;;  %986 = vst [vmem:[#allocation3 + $0x30] sm:$0xf] %v984_v58  ;;  %v275_v51 = vld [vmem:[#allocation3 + $0x40] sm:$0xf]  ;;  %v190_v16 = vpop.permute.xlu1 %189 }
 0x142   :  { %987 = vst [vmem:[#allocation3 + $0x38] sm:$0xf] %v985_v42  ;;  %v286_v10 = vsel %vm281_vm3, %v276_v1, 0  ;;  %v1041_v49 = vand.u32 4294901760, %v3915_v12  ;;  %v935_v55 = vpop.permute.xlu0 %934  ;;  %v194_v22 = vsel %vm193_vm12, %v3788_v60, %v190_v16  ;;  %v195_v24 = vsel %vm193_vm12, %v190_v16, %v3764_v44 }
 0x143   :  { %v3938_v18 = vand.u32 4294901760, %v286_v10  ;;  %v283_v25 = vsel %vm281_vm3, %v275_v51, 0  ;;  %v898_v37 = vsel %vm3838_vm14, %v894_v57, 0.0  ;;  %v198_v26 = vsel %vm3838_vm14, %v194_v22, 0.0  ;;  %v3969_v45 = vld [vmem:[#allocation3] sm:$0xff] }
 0x144   :  { %v199_v28 = vsel %vm3853_vm15, %v195_v24, 0.0  ;;  %v3965_v44 = vsub.f32 %v3915_v12, %v1041_v49  ;;  %v899_v60 = vsel %vm3853_vm15, %v895_v15, 0.0  ;;  %v202_v34 = vrot.slane %v198_v26, 4 }
 0x145   :  { %v203_v35 = vrot.slane %v199_v28, 4  ;;  %v384_v52 = vand.u32 4294901760, %v3933_v7  ;;  %v910_v62 = vpop.permute.xlu1 %909  ;;  %v3972_v58 = vand.u32 4294901760, %v283_v25  ;;  %v414_v42 = vand.u32 4294901760, %v3944_v21 }
 0x146   :  { %v995_v63 = vpop.permute.xlu0 %994  ;;  %v3976_v1 = vsub.f32 %v286_v10, %v3938_v18  ;;  %v4937_v57 = vand.u32 4294901760, %v3965_v44  ;;  %206 = vst [vmem:[#allocation3 + $0x20] sm:$0xf0] %v202_v34  ;;  %v913_v51 = vsel %vm149_vm1, %v3796_v8, %v910_v62  ;;  %v914_v15 = vsel %vm149_vm1, %v910_v62, %v3766_v46 }
 0x147   :  { %207 = vst [vmem:[#allocation3 + $0x28] sm:$0xf0] %v203_v35  ;;  %v1000_v16 = vsel %vm240_vm9, %v995_v63, %v3818_v30  ;;  %v269_v24 = vld [vmem:[#allocation3 + $0x10] sm:$0xff]  ;;  %v938_v10 = vsel %vm175_vm11, %v3827_v31, %v935_v55  ;;  %v917_v28 = vsel %vm3675_vm6, %v913_v51, 0.0  ;;  %v918_v34 = vsel %vm3685_vm7, %v914_v15, 0.0 }
 0x148   :  { %v270_v26 = vld [vmem:[#allocation3 + $0x18] sm:$0xff]  ;;  %1004 = vst [vmem:[#allocation3 + $0x30] sm:$0xf0] %v1000_v16  ;;  %v1043_v8 = vand.u32 4294901760, %v3969_v45  ;;  %900 = vst [vmem:[#allocation3 + $0x10] sm:$0xf] %v898_v37  ;;  %v3996_v31 = vsub.f32 %v283_v25, %v3972_v58  ;;  %v4003_v15 = vsub.f32 %v3965_v44, %v4937_v57 }
 0x149   :  { %v3993_v46 = vld [vmem:[#allocation3 + $0x38] sm:$0xff]  ;;  %901 = vst [vmem:[#allocation3 + $0x18] sm:$0xf] %v899_v60  ;;  %v921_v30 = vrot.slane %v917_v28, 4  ;;  %v922_v35 = vrot.slane %v918_v34, 4  ;;  %v292_v62 = vand.u32 4294901760, %v270_v26  ;;  %v952_v32 = vpop.permute.xlu1 %951 }
 0x14a   :  { %v294_v63 = vand.u32 4294901760, %v269_v24  ;;  %v1053_v51 = vand.u32 4294901760, %v3993_v46  ;;  %v4938_v29 = vand.u32 4294901760, %v3976_v1  ;;  %v955_v37 = vsel %vm193_vm12, %v3808_v23, %v952_v32 }
 0x14b   :  { %925 = vst [vmem:[#allocation3 + $0x10] sm:$0xf0] %v921_v30  ;;  %926 = vst [vmem:[#allocation3 + $0x18] sm:$0xf0] %v922_v35  ;;  %v956_v60 = vsel %vm193_vm12, %v952_v32, %v3770_v48  ;;  %v4011_v25 = vpack.c.bf16 %v292_v62, %v288_v38  ;;  %v4013_v16 = vsub.f32 %v270_v26, %v292_v62  ;;  %v959_v28 = vsel %vm3838_vm14, %v955_v37, 0.0  ;;  %v1016_v62 = vpop.permute.xlu0 %1015 }
 0x14c   :  { %v960_v34 = vsel %vm3853_vm15, %v956_v60, 0.0  ;;  %v4021_v30 = vpack.c.bf16 %v294_v63, %v290_v40  ;;  %v4023_v23 = vsub.f32 %v269_v24, %v294_v63  ;;  %v939_v48 = vsel %vm175_vm11, %v935_v55, %v3778_v53 }
 0x14d   :  { %v963_v4 = vrot.slane %v959_v28, 4  ;;  %v964_v38 = vrot.slane %v960_v34, 4  ;;  %3294 = vmatprep.subr.bf16.mxu0 %v4011_v25  ;;  %v4941_v32 = vand.u32 4294901760, %v4013_v16  ;;  %v271_v26 = vld [vmem:[#allocation3 + $0x20] sm:$0xff]  ;;  %v1014_v37 = vpop.permute.xlu1 %1013  ;;  %v4033_v27 = vsub.f32 %v3969_v45, %v1043_v8 }
 0x14e   :  { %v272_v35 = vld [vmem:[#allocation3 + $0x28] sm:$0xff]  ;;  %3296 = vmatpush1.bf16.msra.mxu0 %v4021_v30  ;;  %v4939_v40 = vand.u32 4294901760, %v4023_v23  ;;  %v4039_v53 = vsub.f32 %v3976_v1, %v4938_v29  ;;  %v4943_v55 = vand.u32 4294901760, %v3996_v31  ;;  %942 = vst [vmem:[#allocation3 + $0x20] sm:$0xf] %v938_v10  ;;  %v1018_v24 = vsel %vm258_vm13, %v1014_v37, %v1016_v62 }
 0x14f   :  { %943 = vst [vmem:[#allocation3 + $0x28] sm:$0xf] %v939_v48  ;;  %967 = vst [vmem:[#allocation3 + $0x20] sm:$0xf0] %v963_v4  ;;  %v296_v63 = vand.u32 4294901760, %v272_v35  ;;  %v298_v60 = vand.u32 4294901760, %v271_v26  ;;  %v389_v28 = vsub.f32 %v4013_v16, %v4941_v32  ;;  %v4054_v10 = vsub.f32 %v3993_v46, %v1053_v51 }
 0x150   :  { %968 = vst [vmem:[#allocation3 + $0x28] sm:$0xf0] %v964_v38  ;;  %v1031_v34 = vld [vmem:[#allocation3 + $0x30] sm:$0xff]  ;;  %v1022_v57 = vsel %vm3853_vm15, %v1018_v24, 0.0  ;;  %v395_v29 = vsub.f32 %v4023_v23, %v4939_v40  ;;  %v4073_v36 = vsub.f32 %v3996_v31, %v4943_v55 }
 0x151   :  { %1024 = vst [vmem:[#allocation3 + $0x48] sm:$0xf] %v1022_v57  ;;  %v4059_v4 = vpack.c.bf16 %v300_v59, %v296_v63  ;;  %v4061_v38 = vsub.f32 %v272_v35, %v296_v63  ;;  %v4065_v62 = vpack.c.bf16 %v302_v14, %v298_v60  ;;  %v4067_v24 = vsub.f32 %v271_v26, %v298_v60  ;;  %v1012_v40 = vpop.permute.xlu1 %1011 }
 0x152   :  { %v1028_v50 = vld [vmem:[#allocation3 + $0x18] sm:$0xff]  ;;  %v1027_v32 = vld [vmem:[#allocation3 + $0x10] sm:$0xff]  ;;  %v390_v13 = vand.u32 4294901760, %v389_v28  ;;  %v1055_v22 = vand.u32 4294901760, %v1031_v34  ;;  %v1017_v59 = vsel %vm258_vm13, %v1012_v40, %v1014_v37  ;;  %v396_v35 = vand.u32 4294901760, %v395_v29 }
 0x153   :  { %3298 = vmatprep.subr.bf16.mxu0 %v4059_v4  ;;  %v1045_v0 = vand.u32 4294901760, %v1028_v50  ;;  %v1047_v14 = vand.u32 4294901760, %v1027_v32  ;;  %v4945_v57 = vand.u32 4294901760, %v4061_v38  ;;  %v1021_v26 = vsel %vm3838_vm14, %v1017_v59, 0.0 }
 0x154   :  { %3300 = vmatpush1.bf16.msra.mxu0 %v4065_v62  ;;  %v4944_v63 = vand.u32 4294901760, %v4067_v24  ;;  %v4949_v60 = vand.u32 4294901760, %v4033_v27  ;;  %1023 = vst [vmem:[#allocation3 + $0x40] sm:$0xf] %v1021_v26  ;;  %v3301_v29 = vpack.c.bf16 %v390_v13, %v378_v19  ;;  %v4101_v12 = vsub.f32 %v1031_v34, %v1055_v22 }
 0x155   :  { %305 = vmatprep.subr.mxu0 %v3938_v18  ;;  %v4086_v37 = vpack.c.bf16 %v1045_v0, %v1041_v49  ;;  %v4088_v40 = vsub.f32 %v1028_v50, %v1045_v0  ;;  %v4092_v28 = vpack.c.bf16 %v1047_v14, %v1043_v8  ;;  %v4094_v59 = vsub.f32 %v1027_v32, %v1047_v14 }
 0x156   :  { %v401_v26 = vsub.f32 %v4061_v38, %v4945_v57  ;;  %v1029_v48 = vld [vmem:[#allocation3 + $0x20] sm:$0xff]  ;;  %v407_v50 = vsub.f32 %v4067_v24, %v4944_v63  ;;  %v3303_v41 = vpack.c.bf16 %v396_v35, %v384_v52  ;;  %v4946_v0 = vand.u32 4294901760, %v4054_v10 }
 0x157   :  { %v1030_v55 = vld [vmem:[#allocation3 + $0x28] sm:$0xff]  ;;  %3342 = vmatprep.subr.bf16.mxu1 %v4086_v37  ;;  %v1051_v45 = vand.u32 4294901760, %v1029_v48  ;;  %v1141_v8 = vand.u32 4294901760, %v4088_v40  ;;  %v1136_v46 = vsub.f32 %v4033_v27, %v4949_v60 }
 0x158   :  { %v1049_v49 = vand.u32 4294901760, %v1030_v55  ;;  %307 = vmatpush1.msra.mxu0 %v3972_v58  ;;  %3344 = vmatpush1.bf16.msra.mxu1 %v4092_v28  ;;  %v402_v19 = vand.u32 4294901760, %v401_v26  ;;  %v1034_v32 = vld [vmem:[#allocation3 + $0x48] sm:$0xf]  ;;  %v408_v34 = vand.u32 4294901760, %v407_v50 }
 0x159   :  { %3302 = vmatprep.subr.bf16.mxu0 %v3301_v29  ;;  %368 = vmatmul.mubr.f32.vlgmr.msra.gmra.mrb[0].mxu0 %v3903_v54  ;;  %v4121_v57 = vpack.c.bf16 %v1055_v22, %v1051_v45  ;;  %v1039_v13 = vsel %vm281_vm3, %v1034_v32, 0  ;;  %v4126_v52 = vsub.f32 %v1029_v48, %v1051_v45  ;;  %v1142_v22 = vsub.f32 %v4088_v40, %v1141_v8 }
 0x15a   :  { %v4117_v14 = vpack.c.bf16 %v1053_v51, %v1049_v49  ;;  %v4119_v63 = vsub.f32 %v1030_v55, %v1049_v49  ;;  %3304 = vmatpush1.bf16.msra.mxu0 %v3303_v41  ;;  %v3305_v7 = vpack.c.bf16 %v414_v42, %v402_v19  ;;  %v4128_v35 = vand.u32 4294901760, %v1039_v13  ;;  %488 = vmatprep.mubr.f32.mxu0 %v3585_v2 }
 0x15b   :  { %v4971_v51 = vand.u32 4294901760, %v4094_v59  ;;  %v1166_v55 = vsub.f32 %v4054_v10, %v4946_v0  ;;  %v4972_v48 = vand.u32 4294901760, %v3954_v47  ;;  %v1033_v26 = vld [vmem:[#allocation3 + $0x40] sm:$0xf]  ;;  %v4947_v50 = vand.u32 4294901760, %v4126_v52 }
 0x15c   :  { %3346 = vmatprep.subr.bf16.mxu1 %v4117_v14  ;;  %v4948_v42 = vand.u32 4294901760, %v4119_v63  ;;  %3306 = vmatprep.subr.bf16.mxu0 %v3305_v7  ;;  %v1171_v49 = vand.u32 4294901760, %v4101_v12  ;;  %v4151_v45 = vsub.f32 %v1039_v13, %v4128_v35  ;;  %v1036_v41 = vsel %vm281_vm3, %v1033_v26, 0 }
 0x15d   :  { %v1148_v21 = vsub.f32 %v4094_v59, %v4971_v51  ;;  %3348 = vmatpush1.bf16.msra.mxu1 %v4121_v57  ;;  %v3307_v29 = vpack.c.bf16 %v4972_v48, %v408_v34  ;;  %v1143_v19 = vand.u32 4294901760, %v1142_v22  ;;  %v4158_v47 = vand.u32 4294901760, %v1036_v41 }
 0x15e   :  { %1058 = vmatprep.subr.mxu1 %v4128_v35  ;;  %v1154_v7 = vsub.f32 %v4119_v63, %v4948_v42  ;;  %v1137_v34 = vand.u32 4294901760, %v1136_v46  ;;  %v1160_v51 = vsub.f32 %v4126_v52, %v4947_v50  ;;  %v1172_v13 = vsub.f32 %v4101_v12, %v1171_v49 }
 0x15f   :  { %v1149_v32 = vand.u32 4294901760, %v1148_v21  ;;  %3308 = vmatpush1.bf16.msra.mxu0 %v3307_v29  ;;  %v4973_v48 = vand.u32 4294901760, %v4039_v53  ;;  %v4974_v22 = vand.u32 4294901760, %v4003_v15  ;;  %v1167_v0 = vand.u32 4294901760, %v1166_v55 }
 0x160   :  { %v1155_v26 = vand.u32 4294901760, %v1154_v7  ;;  %v1177_v29 = vand.u32 4294901760, %v4151_v45  ;;  %v4173_v46 = vsub.f32 %v1036_v41, %v4158_v47  ;;  %v432_v50 = vand.u32 4294901760, %v4073_v36 }
 0x161   :  { %427 = vmatprep.subr.mxu0 %v4973_v48  ;;  %v3349_v21 = vpack.c.bf16 %v1143_v19, %v4974_v22  ;;  %1060 = vmatpush1.msra.mxu1 %v4158_v47  ;;  %v3351_v42 = vpack.c.bf16 %v1149_v32, %v1137_v34  ;;  %v1161_v60 = vand.u32 4294901760, %v1160_v51  ;;  %v3309_v15 = vpack.c.bf16 %v4013_v16, %v3845_v56 }
 0x162   :  { %1121 = vmatmul.mubr.f32.vlgmr.msra.gmra.mrb[0].mxu1 %v3903_v54  ;;  %v3353_v53 = vpack.c.bf16 %v1167_v0, %v1155_v26  ;;  %v1178_v55 = vsub.f32 %v4151_v45, %v1177_v29  ;;  %v1173_v19 = vand.u32 4294901760, %v1172_v13  ;;  %v1183_v41 = vand.u32 4294901760, %v4173_v46 }
 0x163   :  { %3350 = vmatprep.subr.bf16.mxu1 %v3349_v21  ;;  %433 = vmatpush1.msra.mxu0 %v432_v50  ;;  %v3311_v36 = vpack.c.bf16 %v4023_v23, %v3872_v3  ;;  %v3313_v54 = vpack.c.bf16 %v3877_v9, %v4061_v38  ;;  %v3315_v50 = vpack.c.bf16 %v3882_v11, %v4067_v24  ;;  %v4975_v48 = vand.u32 4294901760, %v3845_v56 }
 0x164   :  { %3352 = vmatpush1.bf16.msra.mxu1 %v3351_v42  ;;  %3310 = vmatprep.subr.bf16.mxu0 %v3309_v15  ;;  %v3355_v0 = vpack.c.bf16 %v1173_v19, %v1161_v60  ;;  %v1184_v32 = vsub.f32 %v4173_v46, %v1183_v41  ;;  %v1179_v42 = vand.u32 4294901760, %v1178_v55  ;;  %v3357_v60 = vpack.c.bf16 %v4088_v40, %v3965_v44 }
 0x165   :  { %3354 = vmatprep.subr.bf16.mxu1 %v3353_v53  ;;  %490 = vmatmul.mubr.f32.vlgmr.msra.gmra.mrb[0].mxu0 %v3820_v33  ;;  %v3359_v34 = vpack.c.bf16 %v4094_v59, %v4033_v27  ;;  %v3361_v51 = vpack.c.bf16 %v4054_v10, %v4119_v63  ;;  %v3363_v13 = vpack.c.bf16 %v4101_v12, %v4126_v52  ;;  %v4976_v22 = vand.u32 4294901760, %v4013_v16 }
 0x166   :  { %1241 = vmatprep.mubr.f32.mxu1 %v3585_v2  ;;  %3312 = vmatpush1.bf16.msra.mxu0 %v3311_v36  ;;  %v1185_v7 = vand.u32 4294901760, %v1184_v32  ;;  %v4977_v26 = vand.u32 4294901760, %v3872_v3  ;;  %v4978_v15 = vand.u32 4294901760, %v4023_v23  ;;  %v4980_v56 = vand.u32 4294901760, %v3877_v9 }
 0x167   :  { %580 = vmatprep.mubr.f32.mxu0 %v3585_v2  ;;  %3314 = vmatprep.subr.bf16.mxu0 %v3313_v54  ;;  %v3325_v21 = vpack.c.bf16 %v4976_v22, %v4975_v48  ;;  %v4981_v3 = vand.u32 4294901760, %v4067_v24  ;;  %v4982_v23 = vand.u32 4294901760, %v3882_v11  ;;  %v4983_v19 = vand.u32 4294901760, %v3965_v44  ;;  %v1646_v22 = vld [vmem:[%s4929_s3] sm:$0xf] }
 0x168   :  { %3356 = vmatpush1.bf16.msra.mxu1 %v3355_v0  ;;  %v3327_v53 = vpack.c.bf16 %v4978_v15, %v4977_v26  ;;  %v4985_v36 = vand.u32 4294901760, %v4033_v27  ;;  %v4986_v54 = vand.u32 4294901760, %v4094_v59  ;;  %v4987_v11 = vand.u32 4294901760, %v4119_v63 }
 0x169   :  { %1180 = vmatprep.subr.mxu1 %v1179_v42  ;;  %v3331_v55 = vpack.c.bf16 %v4982_v23, %v4981_v3  ;;  %v3373_v9 = vpack.c.bf16 %v1141_v8, %v4983_v19  ;;  %v4988_v44 = vand.u32 4294901760, %v4054_v10  ;;  %v4990_v27 = vand.u32 4294901760, %v4126_v52 }
 0x16a   :  { %3316 = vmatpush1.bf16.msra.mxu0 %v3315_v50  ;;  %v3375_v0 = vpack.c.bf16 %v4986_v54, %v4985_v36 }
 0x16b   :  { %522 = vmatprep.subr.mxu0 %v3976_v1  ;;  %v3377_v24 = vpack.c.bf16 %v4988_v44, %v4987_v11 }
 0x16c   :  { %1186 = vmatpush1.msra.mxu1 %v1185_v7 }
 0x16d   :  { %3358 = vmatprep.subr.bf16.mxu1 %v3357_v60  ;;  %1243 = vmatmul.mubr.f32.vlgmr.msra.gmra.mrb[0].mxu1 %v3820_v33 }
 0x16e   :  { %3360 = vmatpush1.bf16.msra.mxu1 %v3359_v34  ;;  %1333 = vmatprep.mubr.f32.mxu1 %v3585_v2 }
 0x16f   :  { %525 = vmatpush1.msra.mxu0 %v3996_v31  ;;  %3362 = vmatprep.subr.bf16.mxu1 %v3361_v51  ;;  %v1644_v51 = vld [vmem:[%s4928_s2] sm:$0xf] }
 0x170   :  { %3318 = vmatprep.subr.bf16.mxu0 %v4011_v25  ;;  %583 = vmatmul.mubr.f32.vlgmr.msra.gmra.mrb[0].mxu0 %v3833_v39 }
 0x171   :  { %3320 = vmatpush1.bf16.msra.mxu0 %v4021_v30  ;;  %663 = vmatprep.mubr.f32.mxu0 %v3585_v2 }
 0x172   :  { %3322 = vmatprep.subr.bf16.mxu0 %v4059_v4  ;;  %3364 = vmatpush1.bf16.msra.mxu1 %v3363_v13 }
 0x173   :  { %1275 = vmatprep.subr.mxu1 %v4151_v45 }
 0x175   :  { %3324 = vmatpush1.bf16.msra.mxu0 %v4065_v62 }
 0x176   :  { %606 = vmatprep.subr.mxu0 %v3938_v18  ;;  %1278 = vmatpush1.msra.mxu1 %v4173_v46 }
 0x177   :  { %3366 = vmatprep.subr.bf16.mxu1 %v4086_v37  ;;  %1336 = vmatmul.mubr.f32.vlgmr.msra.gmra.mrb[0].mxu1 %v3833_v39  ;;  %v4979_v39 = vand.u32 4294901760, %v4061_v38  ;;  %v4984_v38 = vand.u32 4294901760, %v3976_v1  ;;  %v4989_v1 = vand.u32 4294901760, %v3996_v31 }
 0x178   :  { %3368 = vmatpush1.bf16.msra.mxu1 %v4092_v28  ;;  %1416 = vmatprep.mubr.f32.mxu1 %v3585_v2 }
 0x179   :  { %608 = vmatpush1.msra.mxu0 %v3972_v58  ;;  %3370 = vmatprep.subr.bf16.mxu1 %v4117_v14  ;;  %v3329_v16 = vpack.c.bf16 %v4980_v56, %v4979_v39 }
 0x17a   :  { %3326 = vmatprep.subr.bf16.mxu0 %v3325_v21  ;;  %667 = vmatmul.mubr.f32.vlgmr.msra.gmra.mrb[0].mxu0 %v3849_v61 }
 0x17b   :  { %3328 = vmatpush1.bf16.msra.mxu0 %v3327_v53  ;;  %767 = vmatprep.mubr.f32.mxu0 %v3585_v2 }
 0x17c   :  { %3330 = vmatprep.subr.bf16.mxu0 %v3329_v16  ;;  %3372 = vmatpush1.bf16.msra.mxu1 %v4121_v57 }
 0x17d   :  { %1359 = vmatprep.subr.mxu1 %v4128_v35 }
 0x17f   :  { %3332 = vmatpush1.bf16.msra.mxu0 %v3331_v55 }
 0x180   :  { %708 = vmatprep.subr.mxu0 %v4984_v38  ;;  %1361 = vmatpush1.msra.mxu1 %v4158_v47 }
 0x181   :  { %3374 = vmatprep.subr.bf16.mxu1 %v3373_v9  ;;  %1420 = vmatmul.mubr.f32.vlgmr.msra.gmra.mrb[0].mxu1 %v3849_v61  ;;  %v3379_v61 = vpack.c.bf16 %v1171_v49, %v4990_v27  ;;  %v3594_v49 = vmov 0  }
 0x182   :  { %3376 = vmatpush1.bf16.msra.mxu1 %v3375_v0  ;;  %1520 = vmatprep.mubr.f32.mxu1 %v3585_v2 }
 0x183   :  { %712 = vmatpush1.msra.mxu0 %v4989_v1  ;;  %3378 = vmatprep.subr.bf16.mxu1 %v3377_v24 }
 0x184   :  { %3334 = vmatprep.subr.bf16.mxu0 %v4011_v25  ;;  %769 = vmatmul.mubr.f32.vlgmr.msra.gmra.mrb[0].mxu0 %v3820_v33 }
 0x185   :  { %3336 = vmatpush1.bf16.msra.mxu0 %v4021_v30  ;;  %849 = vmatprep.mubr.f32.mxu0 %v3585_v2 }
 0x186   :  { %3338 = vmatprep.subr.bf16.mxu0 %v4059_v4  ;;  %3380 = vmatpush1.bf16.msra.mxu1 %v3379_v61 }
 0x187   :  { %1461 = vmatprep.subr.mxu1 %v1177_v29  ;;  %3539 = vset.pattern.permute.xlu1 %v3594_v49 }
 0x188   :  { %3540 = vset.pattern.permute.xlu0 %v3594_v49 }
 0x189   :  { %3340 = vmatpush1.bf16.msra.mxu0 %v4065_v62 }
 0x18a   :  { %792 = vmatprep.subr.mxu0 %v3938_v18  ;;  %1465 = vmatpush1.msra.mxu1 %v1183_v41 }
 0x18b   :  { %3382 = vmatprep.subr.bf16.mxu1 %v4086_v37  ;;  %1522 = vmatmul.mubr.f32.vlgmr.msra.gmra.mrb[0].mxu1 %v3820_v33 }
 0x18c   :  { %3384 = vmatpush1.bf16.msra.mxu1 %v4092_v28  ;;  %1602 = vmatprep.mubr.f32.mxu1 %v3585_v2 }
 0x18d   :  { %794 = vmatpush1.msra.mxu0 %v3972_v58  ;;  %3386 = vmatprep.subr.bf16.mxu1 %v4117_v14 }
 0x18e   :  { %851 = vmatmul.mubr.f32.vlgmr.msra.gmra.mrb[0].mxu0 %v3820_v33 }
 0x18f   :  { %1955 = vmatprep.mubr.f32.mxu0 %v3585_v2 }
 0x190   :  { %3388 = vmatpush1.bf16.msra.mxu1 %v4121_v57 }
 0x191   :  { %1545 = vmatprep.subr.mxu1 %v4128_v35 }
 0x194   :  { %1547 = vmatpush1.msra.mxu1 %v4158_v47 }
 0x195   :  { %1604 = vmatmul.mubr.f32.vlgmr.msra.gmra.mrb[0].mxu1 %v3820_v33 }
 0x196   :  { %2708 = vmatprep.mubr.f32.mxu1 %v3585_v2 }
 0x261   :  { %v852_v18 = vpop.f32.mrb[0].mxu0 }
 0x262   :  { %v1616_v31 = vmul.f32 %v852_v18, %v852_v18  ;;  %v854_v25 = vpop.f32.mrb[1].mxu0  ;;  %v1610_v58 = vsel %vm281_vm3, %v852_v18, 0.0 }
 0x263   :  { %v1617_v30 = vmul.f32 %v854_v25, %v854_v25  ;;  %v1611_v10 = vsel %vm281_vm3, %v854_v25, 0.0 }
 0x264   :  { %v1612_v4 = vadd.f32 %v1611_v10, %v1610_v58  ;;  %v1618_v62 = vsel %vm281_vm3, %v1616_v31, 0.0 }
 0x265   :  { %v1619_v57 = vsel %vm281_vm3, %v1617_v30, 0.0 }
 0x266   :  { %1613 = vadd.xlane.f32.xlu0 %v1612_v4  ;;  %v1620_v63 = vadd.f32 %v1619_v57, %v1618_v62 }
 0x268   :  { %v1605_v37 = vpop.f32.mrb[0].mxu1 }
 0x269   :  { %v1630_v40 = vmul.f32 %v1605_v37, %v1605_v37  ;;  %v1607_v33 = vpop.f32.mrb[1].mxu1  ;;  %v1624_v28 = vsel %vm281_vm3, %v1605_v37, 0.0 }
 0x26a   :  { %v1631_v59 = vmul.f32 %v1607_v33, %v1607_v33  ;;  %1621 = vadd.xlane.f32.xlu0 %v1620_v63  ;;  %v1625_v12 = vsel %vm281_vm3, %v1607_v33, 0.0 }
 0x26b   :  { %v1626_v8 = vadd.f32 %v1625_v12, %v1624_v28  ;;  %v1632_v14 = vsel %vm281_vm3, %v1630_v40, 0.0 }
 0x26c   :  { %v1633_v52 = vsel %vm281_vm3, %v1631_v59, 0.0 }
 0x26d   :  { %1627 = vadd.xlane.f32.xlu1 %v1626_v8  ;;  %v1634_v35 = vadd.f32 %v1633_v52, %v1632_v14 }
 0x26f   :  { %1635 = vadd.xlane.f32.xlu0 %v1634_v35 }
 0x2f3   :  { %v1614_v45 = vpop.xlane.xlu0 %1613 }
 0x2f7   :  { %v1622_v47 = vpop.xlane.xlu0 %1621 }
 0x2fa   :  { %v1628_v29 = vpop.xlane.xlu1 %1627 }
 0x2fb   :  { %v1629_v46 = vadd.f32 %v1628_v29, %v1614_v45 }
 0x2fc   :  { %v1636_v41 = vpop.xlane.xlu0 %1635 }
 0x2fd   :  { %v1638_v32 = vmul.f32 0.001953125, %v1629_v46  ;;  %v1637_v42 = vadd.f32 %v1636_v41, %v1622_v47 }
 0x2ff   :  { %v1640_v50 = vmul.f32 %v1638_v32, %v1638_v32  ;;  %v1639_v7 = vmul.f32 0.001953125, %v1637_v42 }
 0x301   :  { %v1641_v60 = vsub.f32 %v1639_v7, %v1640_v50 }
 0x303   :  { %v1642_v34 = vadd.f32 1e-05, %v1641_v60 }
 0x305   :  { %3556 = vrsqrt.f32 %v1642_v34 }
 0x30f   :  { %v3557_v13 = vpop.eup %3556 }
 0x310   :  { %v1645_v48 = vmul.f32 %v3557_v13, %v1644_v51 }
 0x312   :  { %1651 = vperm.xlu1 %3539, %v1645_v48   ;;  %v1647_v21 = vmul.f32 %v1645_v48, %v1638_v32 }
 0x314   :  { %v1648_v26 = vsub.f32 %v1646_v22, %v1647_v21 }
 0x316   :  { %1658 = vperm.xlu0 %3540, %v1648_v26  }
 0x391   :  { %v1652_v15 = vpop.permute.xlu1 %1651 }
 0x392   :  { %v1654_v53 = vmul.f32 %v1652_v15, %v852_v18  ;;  %v1655_v39 = vmul.f32 %v1652_v15, %v854_v25  ;;  %v1663_v56 = vmul.f32 %v1652_v15, %v1605_v37  ;;  %v1664_v16 = vmul.f32 %v1652_v15, %v1607_v33 }
 0x395   :  { %v1659_v3 = vpop.permute.xlu0 %1658 }
 0x396   :  { %v1661_v23 = vadd.f32 %v1659_v3, %v1654_v53  ;;  %v1662_v55 = vadd.f32 %v1659_v3, %v1655_v39  ;;  %v1665_v19 = vadd.f32 %v1663_v56, %v1659_v3  ;;  %v1666_v9 = vadd.f32 %v1664_v16, %v1659_v3 }
 0x398   :  { %v1667_v38 = vmax.f32 %v1661_v23, 0.0  ;;  %v1668_v36 = vmax.f32 %v1662_v55, 0.0  ;;  %v1669_v54 = vmax.f32 %v1665_v19, 0.0  ;;  %v1670_v0 = vmax.f32 %v1666_v9, 0.0 }
 0x39a   :  { %v1673_v11 = vcombine.low %v1667_v38, %v1668_v36  ;;  %v1684_v44 = vcombine.low %v1669_v54, %v1670_v0 }
 0x39c   :  { %1674 = vrot.lane.b32.xlu1 %v1673_v11, %s3584_s26 }
 0x3a0   :  { %1685 = vrot.lane.b32.xlu1 %v1684_v44, %s3584_s26  ;;  %s3560_s26 = scalar_lea.vmem %s3281_s25, 256 }
 0x3a1   :  { %p3561_p0 = scmp.ne.s32.totalorder %s3281_s25, %s3560_s26  ;;  %p3566_p2 = scmp.lt.s32.totalorder %s3560_s26, %s3560_s26 }
 0x3a3   :  { %p3567_p3 = por %p3566_p2, %p3565_p1 }
 0x3a5   :  { %p3568_p4 = pnand %p3567_p3, %p3561_p0 }
 0x40e   :  { %v1675_v24 = vpop.permute.xlu1 %1674 }
 0x40f   :  { %v1676_v1 = vrot.slane %v1675_v24, 4 }
 0x411   :  { %v1677_v27 = vsel %vm71_vm4, %v1676_v1, %v1675_v24  ;;  %1681 = vst.msk [vmem:[#allocation2 + $0x8] sm:$0xf] %vm58_vm0, %v1676_v1 }
 0x412   :  { %1680 = vst.msk [vmem:[#allocation2] sm:$0xff] %vm3656_vm5, %v1677_v27  ;;  %v1686_v61 = vpop.permute.xlu1 %1685 }
 0x413   :  { %v1687_v18 = vrot.slane %v1686_v61, 4 }
 0x415   :  { %v1688_v31 = vsel %vm71_vm4, %v1687_v18, %v1686_v61  ;;  %1692 = vst.msk [vmem:[#allocation2 + $0x14] sm:$0xf] %vm58_vm0, %v1687_v18  ;;  %vm4991_vm0 = vcmask 293888  }
 0x416   :  { %1691 = vst.msk [vmem:[#allocation2 + $0xc] sm:$0xff] %vm3656_vm5, %v1688_v31 }
 0x418   :  { %v1782_v25 = vld [vmem:[#allocation2 + $0x8] sm:$0xf] }
 0x419   :  { %v1740_v58 = vld [vmem:[#allocation2 + $0x8] sm:$0xf]  ;;  %1790 = vrot.lane.b32.xlu0 %v1782_v25, %s3589_s9  ;;  %v1806_v30 = vld [vmem:[#allocation2] sm:$0xff] }
 0x41a   :  { %1748 = vrot.lane.b32.xlu1 %v1740_v58, %s3586_s29  ;;  %v4315_v10 = vcombine.high %v1806_v30, %v1806_v30  ;;  %v1698_v4 = vsel %vm3675_vm6, %v1806_v30, 0.0  ;;  %v1721_v62 = vld [vmem:[#allocation2 + $0x8] sm:$0xf]  ;;  %v1706_v49 = vcombine.low %v1806_v30, %v1806_v30 }
 0x41b   :  { %1700 = vst [vmem:[#allocation3] sm:$0xf] %v1698_v4  ;;  %v1807_v63 = vld [vmem:[#allocation2 + $0x8] sm:$0xf] }
 0x41c   :  { %v2496_v57 = vld [vmem:[#allocation2 + $0x14] sm:$0xf]  ;;  %v1699_v6 = vsel %vm3685_vm7, %v4315_v10, 0.0  ;;  %v1765_v40 = vld [vmem:[#allocation2 + $0x8] sm:$0xf] }
 0x41d   :  { %2504 = vrot.lane.b32.xlu0 %v2496_v57, %s3586_s29  ;;  %1701 = vst [vmem:[#allocation3 + $0x8] sm:$0xf] %v1699_v6  ;;  %v2538_v37 = vld [vmem:[#allocation2 + $0x14] sm:$0xf]  ;;  %v4328_v28 = vld [vmem:[#allocation2 + $0xc] sm:$0xff] }
 0x41e   :  { %1729 = vrot.lane.b32.xlu1 %v1721_v62, %s3587_s30  ;;  %v2477_v33 = vld [vmem:[#allocation2 + $0x14] sm:$0xf]  ;;  %v1844_v59 = vld [vmem:[#allocation2 + $0x8] sm:$0xf]  ;;  %v2480_v45 = vcombine.high %v4328_v28, %v4328_v28  ;;  %v2462_v47 = vcombine.low %v4328_v28, %v4328_v28 }
 0x41f   :  { %v2563_v12 = vld [vmem:[#allocation2 + $0x14] sm:$0xf]  ;;  %v3551_v8 = vld [vmem:[#allocation2 + $0x8] ss:$0 sps:$4 sm:$0xff]  }
 0x420   :  { %v2521_v14 = vld [vmem:[#allocation2 + $0x14] sm:$0xf]  ;;  %v3552_v52 = vld [vmem:[#allocation2 + $0x8] ss:$0 sps:$4 sm:$0xff]   ;;  %v2455_v24 = vsel %vm3685_vm7, %v2480_v45, 0.0 }
 0x421   :  { %2546 = vrot.lane.b32.xlu0 %v2538_v37, %s3589_s9  ;;  %v3554_v35 = vld [vmem:[#allocation2 + $0x14] ss:$0 sps:$4 sm:$0xff]  }
 0x422   :  { %1815 = vrot.lane.b32.xlu1 %v1807_v63, %s3588_s8  ;;  %v3555_v29 = vld [vmem:[#allocation2 + $0x14] ss:$0 sps:$4 sm:$0xff]  }
 0x423   :  { %v2600_v46 = vld [vmem:[#allocation2 + $0x14] sm:$0xf] }
 0x425   :  { %1811 = vrot.lane.b32.xlu0 %v1806_v30, %s3588_s8 }
 0x426   :  { %1773 = vrot.lane.b32.xlu1 %v1765_v40, %s3590_s10 }
 0x429   :  { %2466 = vrot.lane.b32.xlu0 %v4328_v28, %s3592_s12 }
 0x42a   :  { %2485 = vrot.lane.b32.xlu1 %v2477_v33, %s3587_s30 }
 0x42d   :  { %2481 = vrot.lane.b32.xlu0 %v4328_v28, %s3587_s30 }
 0x42e   :  { %1852 = vrot.lane.b32.xlu1 %v1844_v59, %s3591_s11 }
 0x431   :  { %2567 = vrot.lane.b32.xlu0 %v4328_v28, %s3588_s8 }
 0x432   :  { %2571 = vrot.lane.b32.xlu1 %v2563_v12, %s3588_s8 }
 0x435   :  { %1712 = vrot.lane.b32.xlu0 %v3551_v8, %s3592_s12 }
 0x436   :  { %2529 = vrot.lane.b32.xlu1 %v2521_v14, %s3590_s10 }
 0x439   :  { %1835 = vrot.lane.b32.xlu0 %v3552_v52, %s3593_s13 }
 0x43a   :  { %1744 = vrot.lane.b32.xlu1 %v1806_v30, %s3586_s29 }
 0x43d   :  { %2591 = vrot.lane.b32.xlu0 %v3554_v35, %s3593_s13  ;;  %v1693_v35 = vld [vmem:[%s4930_s4] sm:$0xf] }
 0x43e   :  { %1710 = vrot.lane.b32.xlu1 %v1806_v30, %s3592_s12 }
 0x441   :  { %1708 = vrot.lane.b32.xlu0 %v1706_v49, %s3592_s12 }
 0x442   :  { %1725 = vrot.lane.b32.xlu1 %v1806_v30, %s3587_s30 }
 0x445   :  { %1813 = vrot.lane.b32.xlu0 %v4315_v10, %s3588_s8 }
 0x446   :  { %1786 = vrot.lane.b32.xlu1 %v1806_v30, %s3589_s9 }
 0x449   :  { %1771 = vrot.lane.b32.xlu0 %v4315_v10, %s3590_s10 }
 0x44a   :  { %1833 = vrot.lane.b32.xlu1 %v1806_v30, %s3593_s13 }
 0x44d   :  { %1831 = vrot.lane.b32.xlu0 %v1706_v49, %s3593_s13 }
 0x44e   :  { %1769 = vrot.lane.b32.xlu1 %v1806_v30, %s3590_s10 }
 0x451   :  { %2483 = vrot.lane.b32.xlu0 %v2480_v45, %s3587_s30 }
 0x452   :  { %2500 = vrot.lane.b32.xlu1 %v4328_v28, %s3586_s29 }
 0x455   :  { %1850 = vrot.lane.b32.xlu0 %v4315_v10, %s3591_s11 }
 0x456   :  { %1848 = vrot.lane.b32.xlu1 %v1806_v30, %s3591_s11  ;;  %v2454_v30 = vsel %vm3675_vm6, %v4328_v28, 0.0 }
 0x459   :  { %2464 = vrot.lane.b32.xlu0 %v2462_v47, %s3592_s12 }
 0x45a   :  { %2542 = vrot.lane.b32.xlu1 %v4328_v28, %s3589_s9 }
 0x45d   :  { %2569 = vrot.lane.b32.xlu0 %v2480_v45, %s3588_s8 }
 0x45e   :  { %2589 = vrot.lane.b32.xlu1 %v4328_v28, %s3593_s13 }
 0x461   :  { %2527 = vrot.lane.b32.xlu0 %v2480_v45, %s3590_s10 }
 0x462   :  { %2525 = vrot.lane.b32.xlu1 %v4328_v28, %s3590_s10 }
 0x465   :  { %2587 = vrot.lane.b32.xlu0 %v2462_v47, %s3593_s13 }
 0x466   :  { %2468 = vrot.lane.b32.xlu1 %v3555_v29, %s3592_s12 }
 0x469   :  { %2608 = vrot.lane.b32.xlu0 %v2600_v46, %s3591_s11 }
 0x46a   :  { %1746 = vrot.lane.b32.xlu1 %v4315_v10, %s3586_s29 }
 0x46e   :  { %1727 = vrot.lane.b32.xlu1 %v4315_v10, %s3587_s30 }
 0x472   :  { %1788 = vrot.lane.b32.xlu1 %v4315_v10, %s3589_s9 }
 0x476   :  { %2502 = vrot.lane.b32.xlu1 %v2480_v45, %s3586_s29 }
 0x47a   :  { %2544 = vrot.lane.b32.xlu1 %v2480_v45, %s3589_s9 }
 0x47e   :  { %2606 = vrot.lane.b32.xlu1 %v2480_v45, %s3591_s11 }
 0x482   :  { %2604 = vrot.lane.b32.xlu1 %v4328_v28, %s3591_s11 }
 0x48b   :  { %v4388_v41 = vpop.permute.xlu0 %1790 }
 0x48c   :  { %v4390_v32 = vpop.permute.xlu1 %1748 }
 0x48f   :  { %v4392_v42 = vpop.permute.xlu0 %2504 }
 0x490   :  { %v4394_v50 = vpop.permute.xlu1 %1729 }
 0x493   :  { %v4396_v7 = vpop.permute.xlu0 %2546 }
 0x494   :  { %v1816_v60 = vpop.permute.xlu1 %1815 }
 0x497   :  { %v1812_v34 = vpop.permute.xlu0 %1811 }
 0x498   :  { %v1774_v51 = vpop.permute.xlu1 %1773 }
 0x49b   :  { %v4398_v13 = vpop.permute.xlu0 %2466 }
 0x49c   :  { %v4400_v48 = vpop.permute.xlu1 %2485 }
 0x49f   :  { %v4402_v22 = vpop.permute.xlu0 %2481 }
 0x4a0   :  { %v1853_v21 = vpop.permute.xlu1 %1852 }
 0x4a3   :  { %v2568_v26 = vpop.permute.xlu0 %2567 }
 0x4a4   :  { %v2572_v15 = vpop.permute.xlu1 %2571 }
 0x4a7   :  { %v1713_v53 = vpop.permute.xlu0 %1712 }
 0x4a8   :  { %v4404_v39 = vpop.permute.xlu1 %2529 }
 0x4ab   :  { %v1836_v56 = vpop.permute.xlu0 %1835 }
 0x4ac   :  { %v4406_v16 = vpop.permute.xlu1 %1744 }
 0x4af   :  { %v2592_v3 = vpop.permute.xlu0 %2591 }
 0x4b0   :  { %v1711_v23 = vpop.permute.xlu1 %1710 }
 0x4b1   :  { %v1715_v55 = vsel %vm111_vm8, %v1711_v23, %v1713_v53  ;;  %v1873_v53 = vsel %vm4991_vm0, %v1693_v35, 0 }
 0x4b2   :  { %1719 = vst [vmem:[#allocation3 + $0x8] sm:$0xf0] %v1715_v55 }
 0x4b3   :  { %v1709_v19 = vpop.permute.xlu0 %1708 }
 0x4b4   :  { %v4409_v9 = vpop.permute.xlu1 %1725  ;;  %v1714_v38 = vsel %vm111_vm8, %v1709_v19, %v1711_v23 }
 0x4b5   :  { %1718 = vst [vmem:[#allocation3] sm:$0xf0] %v1714_v38 }
 0x4b7   :  { %v1814_v36 = vpop.permute.xlu0 %1813 }
 0x4b8   :  { %v4412_v54 = vpop.permute.xlu1 %1786  ;;  %v1817_v0 = vsel %vm219_vm10, %v1812_v34, %v1814_v36  ;;  %v1818_v11 = vsel %vm219_vm10, %v1814_v36, %v1816_v60 }
 0x4b9   :  { %v4416_v44 = vld [vmem:[#allocation3 + $0x8] sm:$0xff]  ;;  %v1821_v1 = vsel %vm3675_vm6, %v1817_v0, 0.0  ;;  %v1822_v27 = vsel %vm3685_vm7, %v1818_v11, 0.0 }
 0x4ba   :  { %2457 = vst [vmem:[#allocation3 + $0x8] sm:$0xf] %v2455_v24  ;;  %1823 = vst [vmem:[#allocation3 + $0x30] sm:$0xf] %v1821_v1 }
 0x4bb   :  { %1824 = vst [vmem:[#allocation3 + $0x38] sm:$0xf] %v1822_v27  ;;  %v1772_v61 = vpop.permute.xlu0 %1771 }
 0x4bc   :  { %v1834_v18 = vpop.permute.xlu1 %1833  ;;  %v1776_v31 = vsel %vm175_vm11, %v1772_v61, %v1774_v51  ;;  %v4426_v58 = vld [vmem:[#allocation3] sm:$0xff] }
 0x4bd   :  { %v1838_v25 = vsel %vm240_vm9, %v1834_v18, %v1836_v56  ;;  %1780 = vst [vmem:[#allocation3 + $0x28] sm:$0xf] %v1776_v31  ;;  %2456 = vst [vmem:[#allocation3] sm:$0xf] %v2454_v30  ;;  %v1883_v23 = vand.u32 4294901760, %v4426_v58 }
 0x4be   :  { %1842 = vst [vmem:[#allocation3 + $0x38] sm:$0xf0] %v1838_v25 }
 0x4bf   :  { %v1832_v10 = vpop.permute.xlu0 %1831 }
 0x4c0   :  { %v1770_v4 = vpop.permute.xlu1 %1769  ;;  %v1837_v62 = vsel %vm240_vm9, %v1832_v10, %v1834_v18 }
 0x4c1   :  { %v1775_v57 = vsel %vm175_vm11, %v1770_v4, %v1772_v61  ;;  %1841 = vst [vmem:[#allocation3 + $0x30] sm:$0xf0] %v1837_v62  ;;  %v4486_v61 = vsub.f32 %v4426_v58, %v1883_v23 }
 0x4c2   :  { %1779 = vst [vmem:[#allocation3 + $0x20] sm:$0xf] %v1775_v57 }
 0x4c3   :  { %v4433_v6 = vpop.permute.xlu0 %2483 }
 0x4c4   :  { %v4435_v63 = vpop.permute.xlu1 %2500 }
 0x4c5   :  { %v4450_v47 = vld [vmem:[#allocation3 + $0x38] sm:$0xff] }
 0x4c6   :  { %v1893_v38 = vand.u32 4294901760, %v4450_v47 }
 0x4c7   :  { %v1851_v37 = vpop.permute.xlu0 %1850 }
 0x4c8   :  { %v1849_v40 = vpop.permute.xlu1 %1848  ;;  %v1855_v33 = vsel %vm258_vm13, %v1851_v37, %v1853_v21  ;;  %v4455_v34 = vld [vmem:[#allocation3 + $0x30] sm:$0xff]  ;;  %v4491_v31 = vsub.f32 %v4450_v47, %v1893_v38 }
 0x4c9   :  { %v1854_v28 = vsel %vm258_vm13, %v1849_v40, %v1851_v37  ;;  %v1859_v59 = vsel %vm3853_vm15, %v1855_v33, 0.0  ;;  %v1895_v11 = vand.u32 4294901760, %v4455_v34 }
 0x4ca   :  { %v1858_v12 = vsel %vm3838_vm14, %v1854_v28, 0.0  ;;  %1861 = vst [vmem:[#allocation3 + $0x48] sm:$0xf] %v1859_v59  ;;  %v4956_v28 = vand.u32 4294901760, %v4486_v61 }
 0x4cb   :  { %1860 = vst [vmem:[#allocation3 + $0x40] sm:$0xf] %v1858_v12  ;;  %v2465_v8 = vpop.permute.xlu0 %2464  ;;  %v4500_v10 = vsub.f32 %v4455_v34, %v1895_v11 }
 0x4cc   :  { %v4443_v14 = vpop.permute.xlu1 %2542  ;;  %v2470_v52 = vsel %vm111_vm8, %v2465_v8, %v4398_v13 }
 0x4cd   :  { %2474 = vst [vmem:[#allocation3] sm:$0xf0] %v2470_v52 }
 0x4cf   :  { %v2570_v49 = vpop.permute.xlu0 %2569 }
 0x4d0   :  { %v2590_v45 = vpop.permute.xlu1 %2589  ;;  %v2573_v29 = vsel %vm219_vm10, %v2568_v26, %v2570_v49  ;;  %v2574_v46 = vsel %vm219_vm10, %v2570_v49, %v2572_v15  ;;  %v4466_v15 = vand.u32 4294901760, %v1873_v53  ;;  %v4954_v49 = vand.u32 4294901760, %v4491_v31 }
 0x4d1   :  { %v2594_v60 = vsel %vm240_vm9, %v2590_v45, %v2592_v3  ;;  %v2577_v51 = vsel %vm3675_vm6, %v2573_v29, 0.0  ;;  %v2578_v21 = vsel %vm3685_vm7, %v2574_v46, 0.0  ;;  %v1881_v3 = vand.u32 4294901760, %v4416_v44  ;;  %v1871_v1 = vld [vmem:[#allocation3 + $0x48] sm:$0xf] }
 0x4d2   :  { %2598 = vst [vmem:[#allocation3 + $0x38] sm:$0xf0] %v2594_v60  ;;  %2579 = vst [vmem:[#allocation3 + $0x30] sm:$0xf] %v2577_v51  ;;  %v4481_v27 = vsub.f32 %v1873_v53, %v4466_v15  ;;  %v1879_v4 = vsel %vm281_vm3, %v1871_v1, 0  ;;  %v4539_v51 = vsub.f32 %v4486_v61, %v4956_v28  ;;  %v2488_v53 = vsel %vm129_vm2, %v4433_v6, %v4400_v48 }
 0x4d3   :  { %2580 = vst [vmem:[#allocation3 + $0x38] sm:$0xf] %v2578_v21  ;;  %v4462_v56 = vpop.permute.xlu0 %2527  ;;  %v4478_v24 = vsub.f32 %v4416_v44, %v1881_v3  ;;  %v4513_v12 = vand.u32 4294901760, %v1879_v4  ;;  %v2487_v21 = vsel %vm129_vm2, %v4402_v22, %v4433_v6  ;;  %v4558_v22 = vsub.f32 %v4491_v31, %v4954_v49 }
 0x4d4   :  { %v4464_v26 = vpop.permute.xlu1 %2525  ;;  %v4519_v35 = vld [vmem:[#allocation3] sm:$0xff] }
 0x4d5   :  { %v1969_v37 = vand.u32 4294901760, %v4478_v24 }
 0x4d7   :  { %v2588_v55 = vpop.permute.xlu0 %2587 }
 0x4d8   :  { %v2469_v19 = vpop.permute.xlu1 %2468  ;;  %v2593_v36 = vsel %vm240_vm9, %v2588_v55, %v2590_v45  ;;  %v4953_v45 = vand.u32 4294901760, %v4500_v10 }
 0x4d9   :  { %v2471_v0 = vsel %vm111_vm8, %v4398_v13, %v2469_v19  ;;  %2597 = vst [vmem:[#allocation3 + $0x30] sm:$0xf0] %v2593_v36  ;;  %v1870_v13 = vld [vmem:[#allocation3 + $0x40] sm:$0xf]  ;;  %v2636_v19 = vand.u32 4294901760, %v4519_v35  ;;  %v4549_v36 = vsub.f32 %v1879_v4, %v4513_v12 }
 0x4da   :  { %2475 = vst [vmem:[#allocation3 + $0x8] sm:$0xf0] %v2471_v0  ;;  %v1876_v33 = vsel %vm281_vm3, %v1870_v13, 0  ;;  %v4563_v48 = vsub.f32 %v4500_v10, %v4953_v45  ;;  %v2491_v13 = vsel %vm3838_vm14, %v2487_v21, 0.0  ;;  %v2532_v21 = vsel %vm175_vm11, %v4462_v56, %v4404_v39 }
 0x4db   :  { %v4527_v60 = vand.u32 4294901760, %v1876_v33 }
 0x4dc   :  { %v1747_v18 = vpop.permute.xlu1 %1746 }
 0x4dd   :  { %v1750_v25 = vsel %vm149_vm1, %v4406_v16, %v1747_v18  ;;  %v1751_v30 = vsel %vm149_vm1, %v1747_v18, %v4390_v32  ;;  %v4509_v16 = vand.u32 4294901760, %v4481_v27 }
 0x4de   :  { %v1754_v62 = vsel %vm3675_vm6, %v1750_v25, 0.0  ;;  %v1755_v57 = vsel %vm3685_vm7, %v1751_v30, 0.0 }
 0x4df   :  { %v1758_v40 = vrot.slane %v1754_v62, 4  ;;  %v1759_v32 = vrot.slane %v1755_v57, 4  ;;  %v2492_v62 = vsel %vm3853_vm15, %v2488_v53, 0.0 }
 0x4e0   :  { %v1728_v59 = vpop.permute.xlu1 %1727 }
 0x4e1   :  { %1762 = vst [vmem:[#allocation3 + $0x10] sm:$0xf0] %v1758_v40  ;;  %1763 = vst [vmem:[#allocation3 + $0x18] sm:$0xf0] %v1759_v32  ;;  %v1731_v8 = vsel %vm129_vm2, %v4409_v9, %v1728_v59  ;;  %v1732_v52 = vsel %vm129_vm2, %v1728_v59, %v4394_v50  ;;  %v1959_v9 = vsub.f32 %v4481_v27, %v4509_v16  ;;  %v1977_v32 = vand.u32 4294901760, %v4539_v51 }
 0x4e2   :  { %v1735_v29 = vsel %vm3838_vm14, %v1731_v8, 0.0  ;;  %v1736_v46 = vsel %vm3853_vm15, %v1732_v52, 0.0  ;;  %v4534_v50 = vsub.f32 %v4478_v24, %v1969_v37  ;;  %v4582_v40 = vsub.f32 %v4519_v35, %v2636_v19  ;;  %v4590_v52 = vld [vmem:[#allocation3 + $0x8] sm:$0xff] }
 0x4e3   :  { %1737 = vst [vmem:[#allocation3 + $0x10] sm:$0xf] %v1735_v29  ;;  %1738 = vst [vmem:[#allocation3 + $0x18] sm:$0xf] %v1736_v46  ;;  %v2007_v29 = vand.u32 4294901760, %v4558_v22  ;;  %v4593_v46 = vld [vmem:[#allocation3 + $0x38] sm:$0xff] }
 0x4e4   :  { %v1789_v55 = vpop.permute.xlu1 %1788  ;;  %v1971_v4 = vand.u32 4294901760, %v4534_v50  ;;  %v2646_v39 = vand.u32 4294901760, %v4593_v46  ;;  %v4951_v20 = vand.u32 4294901760, %v4582_v40 }
 0x4e5   :  { %v1792_v0 = vsel %vm193_vm12, %v4412_v54, %v1789_v55  ;;  %v1793_v1 = vsel %vm193_vm12, %v1789_v55, %v4388_v41  ;;  %v4570_v54 = vsub.f32 %v1876_v33, %v4527_v60  ;;  %v4572_v41 = vand.u32 4294901760, %v1959_v9 }
 0x4e6   :  { %v1796_v6 = vsel %vm3838_vm14, %v1792_v0, 0.0  ;;  %v1797_v18 = vsel %vm3853_vm15, %v1793_v1, 0.0  ;;  %v4952_v33 = vand.u32 4294901760, %v4549_v36  ;;  %v2013_v9 = vand.u32 4294901760, %v4563_v48 }
 0x4e7   :  { %v1800_v25 = vrot.slane %v1796_v6, 4  ;;  %v1801_v30 = vrot.slane %v1797_v18, 4  ;;  %v4950_v0 = vand.u32 4294901760, %v4570_v54 }
 0x4e8   :  { %v2503_v57 = vpop.permute.xlu1 %2502  ;;  %v4609_v17 = vsub.f32 %v4549_v36, %v4952_v33 }
 0x4e9   :  { %1804 = vst [vmem:[#allocation3 + $0x20] sm:$0xf0] %v1800_v25  ;;  %1805 = vst [vmem:[#allocation3 + $0x28] sm:$0xf0] %v1801_v30  ;;  %v2506_v59 = vsel %vm149_vm1, %v4435_v63, %v2503_v57  ;;  %v2507_v8 = vsel %vm149_vm1, %v2503_v57, %v4392_v42  ;;  %v2634_v57 = vand.u32 4294901760, %v4590_v52 }
 0x4ea   :  { %v1864_v53 = vld [vmem:[#allocation3 + $0x10] sm:$0xff]  ;;  %v2510_v55 = vsel %vm3675_vm6, %v2506_v59, 0.0  ;;  %v2511_v63 = vsel %vm3685_vm7, %v2507_v8, 0.0  ;;  %v1865_v42 = vld [vmem:[#allocation3 + $0x18] sm:$0xff] }
 0x4eb   :  { %2493 = vst [vmem:[#allocation3 + $0x10] sm:$0xf] %v2491_v13  ;;  %v2514_v1 = vrot.slane %v2510_v55, 4  ;;  %v2515_v6 = vrot.slane %v2511_v63, 4  ;;  %v1885_v18 = vand.u32 4294901760, %v1865_v42  ;;  %v1887_v25 = vand.u32 4294901760, %v1864_v53 }
 0x4ec   :  { %2494 = vst [vmem:[#allocation3 + $0x18] sm:$0xf] %v2492_v62  ;;  %v2545_v30 = vpop.permute.xlu1 %2544 }
 0x4ed   :  { %2518 = vst [vmem:[#allocation3 + $0x10] sm:$0xf0] %v2514_v1  ;;  %v2548_v13 = vsel %vm193_vm12, %v4443_v14, %v2545_v30  ;;  %v2549_v62 = vsel %vm193_vm12, %v2545_v30, %v4396_v7  ;;  %v4618_v59 = vpack.c.bf16 %v1885_v18, %v1881_v3  ;;  %v4620_v8 = vsub.f32 %v1865_v42, %v1885_v18 }
 0x4ee   :  { %2519 = vst [vmem:[#allocation3 + $0x18] sm:$0xf0] %v2515_v6  ;;  %v2552_v55 = vsel %vm3838_vm14, %v2548_v13, 0.0  ;;  %v2553_v63 = vsel %vm3853_vm15, %v2549_v62, 0.0  ;;  %v4628_v1 = vpack.c.bf16 %v1887_v25, %v1883_v23  ;;  %v4630_v14 = vsub.f32 %v1864_v53, %v1887_v25  ;;  %v2609_v6 = vpop.permute.xlu0 %2608 }
 0x4ef   :  { %v2531_v7 = vsel %vm175_vm11, %v4464_v26, %v4462_v56  ;;  %v2556_v44 = vrot.slane %v2552_v55, 4  ;;  %v2557_v3 = vrot.slane %v2553_v63, 4  ;;  %3390 = vmatprep.subr.bf16.mxu0 %v4618_v59  ;;  %v4957_v42 = vand.u32 4294901760, %v4620_v8  ;;  %v2624_v63 = vld [vmem:[#allocation3 + $0x30] sm:$0xff] }
 0x4f0   :  { %3392 = vmatpush1.bf16.msra.mxu0 %v4628_v1  ;;  %v2607_v18 = vpop.permute.xlu1 %2606  ;;  %v1867_v30 = vld [vmem:[#allocation3 + $0x28] sm:$0xff]  ;;  %v1866_v58 = vld [vmem:[#allocation3 + $0x20] sm:$0xff]  ;;  %v4955_v23 = vand.u32 4294901760, %v4630_v14  ;;  %v4642_v53 = vsub.f32 %v4593_v46, %v2646_v39  ;;  %v4647_v56 = vsub.f32 %v4570_v54, %v4950_v0  ;;  %v4652_v26 = vsub.f32 %v4582_v40, %v4951_v20 }
 0x4f1   :  { %v2611_v25 = vsel %vm258_vm13, %v2607_v18, %v2609_v6  ;;  %v1889_v13 = vand.u32 4294901760, %v1867_v30  ;;  %2536 = vst [vmem:[#allocation3 + $0x28] sm:$0xf] %v2532_v21  ;;  %2561 = vst [vmem:[#allocation3 + $0x28] sm:$0xf0] %v2557_v3  ;;  %v1891_v62 = vand.u32 4294901760, %v1866_v58  ;;  %v1982_v55 = vsub.f32 %v4620_v8, %v4957_v42 }
 0x4f2   :  { %2535 = vst [vmem:[#allocation3 + $0x20] sm:$0xf] %v2531_v7  ;;  %2560 = vst [vmem:[#allocation3 + $0x20] sm:$0xf0] %v2556_v44  ;;  %v2615_v0 = vsel %vm3853_vm15, %v2611_v25, 0.0  ;;  %v4663_v20 = vsub.f32 %v4590_v52, %v2634_v57  ;;  %v1988_v21 = vsub.f32 %v4630_v14, %v4955_v23  ;;  %v2019_v7 = vand.u32 4294901760, %v4609_v17 }
 0x4f3   :  { %2617 = vst [vmem:[#allocation3 + $0x48] sm:$0xf] %v2615_v0  ;;  %v4671_v44 = vpack.c.bf16 %v1893_v38, %v1889_v13  ;;  %v4673_v3 = vsub.f32 %v1867_v30, %v1889_v13  ;;  %v4677_v5 = vpack.c.bf16 %v1895_v11, %v1891_v62  ;;  %v4679_v6 = vsub.f32 %v1866_v58, %v1891_v62 }
 0x4f4   :  { %v2605_v25 = vpop.permute.xlu1 %2604  ;;  %v2620_v45 = vld [vmem:[#allocation3 + $0x10] sm:$0xff]  ;;  %v1983_v49 = vand.u32 4294901760, %v1982_v55  ;;  %v2648_v23 = vand.u32 4294901760, %v2624_v63  ;;  %v2730_v28 = vand.u32 4294901760, %v4652_v26  ;;  %v2758_v0 = vand.u32 4294901760, %v4642_v53 }
 0x4f5   :  { %v2621_v33 = vld [vmem:[#allocation3 + $0x18] sm:$0xff]  ;;  %v2610_v47 = vsel %vm258_vm13, %v2605_v25, %v2607_v18  ;;  %3394 = vmatprep.subr.bf16.mxu0 %v4671_v44  ;;  %v2640_v30 = vand.u32 4294901760, %v2620_v45  ;;  %v4959_v34 = vand.u32 4294901760, %v4673_v3  ;;  %v1989_v58 = vand.u32 4294901760, %v1988_v21 }
 0x4f6   :  { %v2638_v38 = vand.u32 4294901760, %v2621_v33  ;;  %v2614_v11 = vsel %vm3838_vm14, %v2610_v47, 0.0  ;;  %3396 = vmatpush1.bf16.msra.mxu0 %v4677_v5  ;;  %v4958_v13 = vand.u32 4294901760, %v4679_v6  ;;  %v2722_v62 = vand.u32 4294901760, %v4663_v20 }
 0x4f7   :  { %2616 = vst [vmem:[#allocation3 + $0x40] sm:$0xf] %v2614_v11  ;;  %1898 = vmatprep.subr.mxu0 %v4513_v12  ;;  %v4700_v43 = vpack.c.bf16 %v2640_v30, %v2636_v19  ;;  %v4702_v25 = vsub.f32 %v2620_v45, %v2640_v30  ;;  %v3397_v21 = vpack.c.bf16 %v1983_v49, %v1971_v4 }
 0x4f8   :  { %v4694_v18 = vpack.c.bf16 %v2638_v38, %v2634_v57  ;;  %v4696_v55 = vsub.f32 %v2621_v33, %v2638_v38  ;;  %v1994_v47 = vsub.f32 %v4673_v3, %v4959_v34  ;;  %v2623_v11 = vld [vmem:[#allocation3 + $0x28] sm:$0xff]  ;;  %v4709_v52 = vsub.f32 %v2624_v63, %v2648_v23 }
 0x4f9   :  { %v2622_v42 = vld [vmem:[#allocation3 + $0x20] sm:$0xff]  ;;  %v2000_v33 = vsub.f32 %v4679_v6, %v4958_v13  ;;  %v2642_v35 = vand.u32 4294901760, %v2623_v11  ;;  %v2740_v49 = vand.u32 4294901760, %v4702_v25  ;;  %v3399_v50 = vpack.c.bf16 %v1989_v58, %v1977_v32 }
 0x4fa   :  { %3438 = vmatprep.subr.bf16.mxu1 %v4694_v18  ;;  %v2644_v45 = vand.u32 4294901760, %v2622_v42  ;;  %v2734_v19 = vand.u32 4294901760, %v4696_v55  ;;  %1900 = vmatpush1.msra.mxu0 %v4527_v60  ;;  %v1995_v4 = vand.u32 4294901760, %v1994_v47  ;;  %v2627_v57 = vld [vmem:[#allocation3 + $0x48] sm:$0xf]  ;;  %v2723_v38 = vsub.f32 %v4663_v20, %v2722_v62 }
 0x4fb   :  { %3440 = vmatpush1.bf16.msra.mxu1 %v4700_v43  ;;  %v2001_v63 = vand.u32 4294901760, %v2000_v33  ;;  %3398 = vmatprep.subr.bf16.mxu0 %v3397_v21  ;;  %v4727_v30 = vpack.c.bf16 %v2646_v39, %v2642_v35  ;;  %v4729_v13 = vsub.f32 %v2623_v11, %v2642_v35  ;;  %v2632_v51 = vsel %vm281_vm3, %v2627_v57, 0 }
 0x4fc   :  { %1961 = vmatmul.mubr.f32.vlgmr.msra.gmra.mrb[2].mxu0 %v4572_v41  ;;  %v4731_v34 = vpack.c.bf16 %v2648_v23, %v2644_v45  ;;  %v3401_v32 = vpack.c.bf16 %v2007_v29, %v1995_v4  ;;  %v4736_v58 = vsub.f32 %v2622_v42, %v2644_v45  ;;  %v4738_v47 = vand.u32 4294901760, %v2632_v51 }
 0x4fd   :  { %3400 = vmatpush1.bf16.msra.mxu0 %v3399_v50  ;;  %2081 = vmatprep.mubr.f32.mxu0 %v3585_v2  ;;  %v2764_v46 = vand.u32 4294901760, %v4709_v52  ;;  %v2735_v39 = vsub.f32 %v4696_v55, %v2734_v19  ;;  %v2741_v23 = vsub.f32 %v4702_v25, %v2740_v49  ;;  %v2746_v22 = vand.u32 4294901760, %v4729_v13 }
 0x4fe   :  { %3442 = vmatprep.subr.bf16.mxu1 %v4727_v30  ;;  %v2759_v29 = vsub.f32 %v4642_v53, %v2758_v0  ;;  %3402 = vmatprep.subr.bf16.mxu0 %v3401_v32  ;;  %v3403_v42 = vpack.c.bf16 %v2013_v9, %v2001_v63  ;;  %v2626_v21 = vld [vmem:[#allocation3 + $0x40] sm:$0xf]  ;;  %v2724_v11 = vand.u32 4294901760, %v2723_v38  ;;  %v4960_v33 = vand.u32 4294901760, %v4736_v58 }
 0x4ff   :  { %3444 = vmatpush1.bf16.msra.mxu1 %v4731_v34  ;;  %v4758_v35 = vsub.f32 %v2632_v51, %v4738_v47  ;;  %v2629_v45 = vsel %vm281_vm3, %v2626_v21, 0  ;;  %v2736_v50 = vand.u32 4294901760, %v2735_v39  ;;  %v2742_v4 = vand.u32 4294901760, %v2741_v23 }
 0x500   :  { %2651 = vmatprep.subr.mxu1 %v4738_v47  ;;  %v2747_v57 = vsub.f32 %v4729_v13, %v2746_v22  ;;  %v4765_v48 = vand.u32 4294901760, %v2629_v45  ;;  %v2753_v9 = vsub.f32 %v4736_v58, %v4960_v33  ;;  %v2765_v63 = vsub.f32 %v4709_v52, %v2764_v46 }
 0x501   :  { %3404 = vmatpush1.bf16.msra.mxu0 %v3403_v42  ;;  %v2770_v38 = vand.u32 4294901760, %v4758_v35  ;;  %v3445_v51 = vpack.c.bf16 %v2736_v50, %v2724_v11  ;;  %v2760_v39 = vand.u32 4294901760, %v2759_v29  ;;  %v2025_v42 = vand.u32 4294901760, %v4647_v56 }
 0x502   :  { %2020 = vmatprep.subr.mxu0 %v2019_v7  ;;  %v2748_v32 = vand.u32 4294901760, %v2747_v57  ;;  %v4778_v23 = vsub.f32 %v2629_v45, %v4765_v48  ;;  %v3447_v21 = vpack.c.bf16 %v2742_v4, %v2730_v28  ;;  %v2754_v33 = vand.u32 4294901760, %v2753_v9 }
 0x503   :  { %2653 = vmatpush1.msra.mxu1 %v4765_v48  ;;  %v3405_v17 = vpack.c.bf16 %v4620_v8, %v4478_v24  ;;  %v2771_v29 = vsub.f32 %v4758_v35, %v2770_v38  ;;  %v2766_v11 = vand.u32 4294901760, %v2765_v63  ;;  %v3407_v28 = vpack.c.bf16 %v4630_v14, %v4486_v61 }
 0x504   :  { %3446 = vmatprep.subr.bf16.mxu1 %v3445_v51  ;;  %2714 = vmatmul.mubr.f32.vlgmr.msra.gmra.mrb[2].mxu1 %v4572_v41  ;;  %v3449_v7 = vpack.c.bf16 %v2760_v39, %v2748_v32  ;;  %v2776_v56 = vand.u32 4294901760, %v4778_v23  ;;  %v3409_v41 = vpack.c.bf16 %v4491_v31, %v4673_v3  ;;  %v3411_v4 = vpack.c.bf16 %v4500_v10, %v4679_v6 }
 0x505   :  { %2026 = vmatpush1.msra.mxu0 %v2025_v42  ;;  %3448 = vmatpush1.bf16.msra.mxu1 %v3447_v21  ;;  %v3451_v26 = vpack.c.bf16 %v2766_v11, %v2754_v33  ;;  %v2772_v50 = vand.u32 4294901760, %v2771_v29  ;;  %v3453_v33 = vpack.c.bf16 %v4696_v55, %v4663_v20  ;;  %v3455_v9 = vpack.c.bf16 %v4702_v25, %v4582_v40 }
 0x506   :  { %3406 = vmatprep.subr.bf16.mxu0 %v3405_v17  ;;  %3450 = vmatprep.subr.bf16.mxu1 %v3449_v7  ;;  %v2777_v45 = vsub.f32 %v4778_v23, %v2776_v56  ;;  %v3457_v63 = vpack.c.bf16 %v4642_v53, %v4729_v13  ;;  %v3459_v51 = vpack.c.bf16 %v4709_v52, %v4736_v58  ;;  %v4992_v32 = vand.u32 4294901760, %v4620_v8 }
 0x507   :  { %2083 = vmatmul.mubr.f32.vlgmr.msra.gmra.mrb[2].mxu0 %v4466_v15  ;;  %2834 = vmatprep.mubr.f32.mxu1 %v3585_v2  ;;  %v4993_v42 = vand.u32 4294901760, %v4486_v61  ;;  %v4994_v21 = vand.u32 4294901760, %v4630_v14  ;;  %v4996_v24 = vand.u32 4294901760, %v4491_v31  ;;  %v4997_v61 = vand.u32 4294901760, %v4679_v6 }
 0x508   :  { %3408 = vmatpush1.bf16.msra.mxu0 %v3407_v28  ;;  %2173 = vmatprep.mubr.f32.mxu0 %v3585_v2  ;;  %v2778_v57 = vand.u32 4294901760, %v2777_v45  ;;  %v3421_v39 = vpack.c.bf16 %v4992_v32, %v1969_v37  ;;  %v4998_v37 = vand.u32 4294901760, %v4500_v10  ;;  %v3469_v31 = vpack.c.bf16 %v2734_v19, %v2722_v62  ;;  %v3239_v28 = vld [vmem:[%s4932_s6] sm:$0xf] }
 0x509   :  { %3410 = vmatprep.subr.bf16.mxu0 %v3409_v41  ;;  %3452 = vmatpush1.bf16.msra.mxu1 %v3451_v26  ;;  %v3423_v17 = vpack.c.bf16 %v4994_v21, %v4993_v42  ;;  %v5000_v7 = vand.u32 4294901760, %v4582_v40  ;;  %v3473_v10 = vpack.c.bf16 %v2758_v0, %v2746_v22  ;;  %v5002_v40 = vand.u32 4294901760, %v4736_v58  ;;  %v3260_v42 = vld [vmem:[%s4926_s0] sm:$0xff]  ;;  %v3292_v21 = vld [vmem:[%s4926_s0 + $0x8] sm:$0xff] }
 0x50a   :  { %2773 = vmatprep.subr.mxu1 %v2772_v50  ;;  %v3427_v14 = vpack.c.bf16 %v4998_v37, %v4997_v61 }
 0x50b   :  { %v3471_v29 = vpack.c.bf16 %v2740_v49, %v5000_v7 }
 0x50c   :  { %3412 = vmatpush1.bf16.msra.mxu0 %v3411_v4 }
 0x50d   :  { %2115 = vmatprep.subr.mxu0 %v4549_v36  ;;  %2779 = vmatpush1.msra.mxu1 %v2778_v57 }
 0x50e   :  { %3454 = vmatprep.subr.bf16.mxu1 %v3453_v33  ;;  %2836 = vmatmul.mubr.f32.vlgmr.msra.gmra.mrb[2].mxu1 %v4466_v15 }
 0x50f   :  { %3456 = vmatpush1.bf16.msra.mxu1 %v3455_v9  ;;  %2926 = vmatprep.mubr.f32.mxu1 %v3585_v2 }
 0x510   :  { %2118 = vmatpush1.msra.mxu0 %v4570_v54  ;;  %3458 = vmatprep.subr.bf16.mxu1 %v3457_v63 }
 0x511   :  { %3414 = vmatprep.subr.bf16.mxu0 %v4618_v59  ;;  %2176 = vmatmul.mubr.f32.vlgmr.msra.gmra.mrb[2].mxu0 %v4481_v27 }
 0x512   :  { %3416 = vmatpush1.bf16.msra.mxu0 %v4628_v1  ;;  %2256 = vmatprep.mubr.f32.mxu0 %v3585_v2 }
 0x513   :  { %3418 = vmatprep.subr.bf16.mxu0 %v4671_v44  ;;  %3460 = vmatpush1.bf16.msra.mxu1 %v3459_v51 }
 0x514   :  { %2868 = vmatprep.subr.mxu1 %v4758_v35 }
 0x516   :  { %3420 = vmatpush1.bf16.msra.mxu0 %v4677_v5 }
 0x517   :  { %2199 = vmatprep.subr.mxu0 %v4513_v12  ;;  %2871 = vmatpush1.msra.mxu1 %v4778_v23  ;;  %v3237_v23 = vld [vmem:[%s4931_s5] sm:$0xf] }
 0x518   :  { %3462 = vmatprep.subr.bf16.mxu1 %v4694_v18  ;;  %2929 = vmatmul.mubr.f32.vlgmr.msra.gmra.mrb[2].mxu1 %v4481_v27  ;;  %v4995_v27 = vand.u32 4294901760, %v4673_v3  ;;  %v4999_v3 = vand.u32 4294901760, %v4549_v36  ;;  %v5001_v36 = vand.u32 4294901760, %v4570_v54 }
 0x519   :  { %3464 = vmatpush1.bf16.msra.mxu1 %v4700_v43  ;;  %3009 = vmatprep.mubr.f32.mxu1 %v3585_v2 }
 0x51a   :  { %2201 = vmatpush1.msra.mxu0 %v4527_v60  ;;  %3466 = vmatprep.subr.bf16.mxu1 %v4727_v30  ;;  %v3425_v8 = vpack.c.bf16 %v4996_v24, %v4995_v27 }
 0x51b   :  { %3422 = vmatprep.subr.bf16.mxu0 %v3421_v39  ;;  %2260 = vmatmul.mubr.f32.vlgmr.msra.gmra.mrb[2].mxu0 %v4509_v16 }
 0x51c   :  { %3424 = vmatpush1.bf16.msra.mxu0 %v3423_v17  ;;  %2360 = vmatprep.mubr.f32.mxu0 %v3585_v2 }
 0x51d   :  { %3426 = vmatprep.subr.bf16.mxu0 %v3425_v8  ;;  %3468 = vmatpush1.bf16.msra.mxu1 %v4731_v34 }
 0x51e   :  { %2952 = vmatprep.subr.mxu1 %v4738_v47 }
 0x520   :  { %3428 = vmatpush1.bf16.msra.mxu0 %v3427_v14 }
 0x521   :  { %2301 = vmatprep.subr.mxu0 %v4999_v3  ;;  %2954 = vmatpush1.msra.mxu1 %v4765_v48 }
 0x522   :  { %3470 = vmatprep.subr.bf16.mxu1 %v3469_v31  ;;  %3013 = vmatmul.mubr.f32.vlgmr.msra.gmra.mrb[2].mxu1 %v4509_v16  ;;  %v3475_v16 = vpack.c.bf16 %v2764_v46, %v5002_v40 }
 0x523   :  { %3472 = vmatpush1.bf16.msra.mxu1 %v3471_v29  ;;  %3113 = vmatprep.mubr.f32.mxu1 %v3585_v2 }
 0x524   :  { %2305 = vmatpush1.msra.mxu0 %v5001_v36  ;;  %3474 = vmatprep.subr.bf16.mxu1 %v3473_v10 }
 0x525   :  { %3430 = vmatprep.subr.bf16.mxu0 %v4618_v59  ;;  %2362 = vmatmul.mubr.f32.vlgmr.msra.gmra.mrb[2].mxu0 %v4466_v15 }
 0x526   :  { %3432 = vmatpush1.bf16.msra.mxu0 %v4628_v1  ;;  %2442 = vmatprep.mubr.f32.mxu0 %v3585_v2 }
 0x527   :  { %3434 = vmatprep.subr.bf16.mxu0 %v4671_v44  ;;  %3476 = vmatpush1.bf16.msra.mxu1 %v3475_v16 }
 0x528   :  { %3054 = vmatprep.subr.mxu1 %v2770_v38 }
 0x52a   :  { %3436 = vmatpush1.bf16.msra.mxu0 %v4677_v5 }
 0x52b   :  { %2385 = vmatprep.subr.mxu0 %v4513_v12  ;;  %3058 = vmatpush1.msra.mxu1 %v2776_v56 }
 0x52c   :  { %3478 = vmatprep.subr.bf16.mxu1 %v4694_v18  ;;  %3115 = vmatmul.mubr.f32.vlgmr.msra.gmra.mrb[2].mxu1 %v4466_v15 }
 0x52d   :  { %3480 = vmatpush1.bf16.msra.mxu1 %v4700_v43  ;;  %3195 = vmatprep.mubr.f32.mxu1 %v3585_v2 }
 0x52e   :  { %2387 = vmatpush1.msra.mxu0 %v4527_v60  ;;  %3482 = vmatprep.subr.bf16.mxu1 %v4727_v30 }
 0x52f   :  { %2444 = vmatmul.mubr.f32.vlgmr.msra.gmra.mrb[2].mxu0 %v4466_v15 }
 0x531   :  { %3484 = vmatpush1.bf16.msra.mxu1 %v4731_v34 }
 0x532   :  { %3138 = vmatprep.subr.mxu1 %v4738_v47 }
 0x535   :  { %3140 = vmatpush1.msra.mxu1 %v4765_v48 }
 0x536   :  { %3197 = vmatmul.mubr.f32.vlgmr.msra.gmra.mrb[2].mxu1 %v4466_v15 }
 0x602   :  { %v2445_v12 = vpop.f32.mrb[2].mxu0 }
 0x603   :  { %v3203_v54 = vsel %vm281_vm3, %v2445_v12, 0.0  ;;  %v3209_v20 = vmul.f32 %v2445_v12, %v2445_v12  ;;  %v2447_v59 = vpop.f32.mrb[3].mxu0 }
 0x604   :  { %v3204_v2 = vsel %vm281_vm3, %v2447_v59, 0.0  ;;  %v3210_v60 = vmul.f32 %v2447_v59, %v2447_v59 }
 0x605   :  { %v3205_v1 = vadd.f32 %v3204_v2, %v3203_v54  ;;  %v3211_v53 = vsel %vm281_vm3, %v3209_v20, 0.0 }
 0x606   :  { %v3212_v44 = vsel %vm281_vm3, %v3210_v60, 0.0 }
 0x607   :  { %3206 = vadd.xlane.f32.xlu0 %v3205_v1  ;;  %v3213_v5 = vadd.f32 %v3212_v44, %v3211_v53 }
 0x609   :  { %v3198_v6 = vpop.f32.mrb[2].mxu1 }
 0x60a   :  { %v3217_v0 = vsel %vm281_vm3, %v3198_v6, 0.0  ;;  %v3223_v34 = vmul.f32 %v3198_v6, %v3198_v6  ;;  %v3200_v15 = vpop.f32.mrb[3].mxu1 }
 0x60b   :  { %3214 = vadd.xlane.f32.xlu0 %v3213_v5  ;;  %v3218_v13 = vsel %vm281_vm3, %v3200_v15, 0.0  ;;  %v3224_v62 = vmul.f32 %v3200_v15, %v3200_v15 }
 0x60c   :  { %v3219_v18 = vadd.f32 %v3218_v13, %v3217_v0  ;;  %v3225_v55 = vsel %vm281_vm3, %v3223_v34, 0.0 }
 0x60d   :  { %v3226_v43 = vsel %vm281_vm3, %v3224_v62, 0.0 }
 0x60e   :  { %3220 = vadd.xlane.f32.xlu1 %v3219_v18  ;;  %v3227_v25 = vadd.f32 %v3226_v43, %v3225_v55 }
 0x610   :  { %3228 = vadd.xlane.f32.xlu0 %v3227_v25 }
 0x694   :  { %v3207_v52 = vpop.xlane.xlu0 %3206 }
 0x698   :  { %v3215_v19 = vpop.xlane.xlu0 %3214 }
 0x69b   :  { %v3221_v49 = vpop.xlane.xlu1 %3220 }
 0x69c   :  { %v3222_v30 = vadd.f32 %v3221_v49, %v3207_v52 }
 0x69d   :  { %v3229_v58 = vpop.xlane.xlu0 %3228 }
 0x69e   :  { %v3231_v47 = vmul.f32 0.001953125, %v3222_v30  ;;  %v3230_v46 = vadd.f32 %v3229_v58, %v3215_v19 }
 0x6a0   :  { %v3233_v22 = vmul.f32 %v3231_v47, %v3231_v47  ;;  %v3232_v35 = vmul.f32 0.001953125, %v3230_v46 }
 0x6a2   :  { %v3234_v48 = vsub.f32 %v3232_v35, %v3233_v22 }
 0x6a4   :  { %v3235_v38 = vadd.f32 1e-05, %v3234_v48 }
 0x6a6   :  { %3558 = vrsqrt.f32 %v3235_v38 }
 0x6b0   :  { %v3559_v11 = vpop.eup %3558 }
 0x6b1   :  { %v3238_v56 = vmul.f32 %v3559_v11, %v3237_v23 }
 0x6b3   :  { %3244 = vperm.xlu1 %3539, %v3238_v56   ;;  %v3240_v41 = vmul.f32 %v3238_v56, %v3231_v47 }
 0x6b5   :  { %v3241_v26 = vsub.f32 %v3239_v28, %v3240_v41 }
 0x6b7   :  { %3251 = vperm.xlu0 %3540, %v3241_v26  }
 0x732   :  { %v3245_v45 = vpop.permute.xlu1 %3244 }
 0x733   :  { %v3247_v50 = vmul.f32 %v3245_v45, %v2445_v12  ;;  %v3248_v4 = vmul.f32 %v3245_v45, %v2447_v59  ;;  %v3256_v57 = vmul.f32 %v3245_v45, %v3198_v6  ;;  %v3257_v33 = vmul.f32 %v3245_v45, %v3200_v15 }
 0x736   :  { %v3252_v9 = vpop.permute.xlu0 %3251 }
 0x737   :  { %v3254_v63 = vadd.f32 %v3252_v9, %v3247_v50  ;;  %v3255_v51 = vadd.f32 %v3252_v9, %v3248_v4  ;;  %v3258_v32 = vadd.f32 %v3256_v57, %v3252_v9  ;;  %v3259_v39 = vadd.f32 %v3257_v33, %v3252_v9 }
 0x739   :  { %v3263_v17 = vcombine.low %v3254_v63, %v3255_v51  ;;  %v3270_v27 = vcombine.low %v3258_v32, %v3259_v39 }
 0x73b   :  { %v3265_v24 = vadd.f32 %v3263_v17, %v3260_v42  ;;  %v3272_v8 = vadd.f32 %v3292_v21, %v3270_v27 }
 0x73d   :  { %3266 = vst [vmem:[#allocation4] sm:$0xff] %v3265_v24  ;;  %3274 = vst [vmem:[#allocation4 + $0x8] sm:$0xff] %v3272_v8 }
 0x73e   :  { %3571 = shalt.err (!%p3568_p4)
}
 0x73f   :  { %s3572_s0 = scalar_lea.hbm %s4933_s7, 256 }
 0x740   :  { %p3573_p5 = scmp.ne.s32.totalorder %s4933_s7, %s3572_s0  ;;  %p3576_p6 = scmp.lt.u32.totalorder %s3572_s0, %s4933_s7 }
 0x742   :  { %p3578_p7 = pnand %p3576_p6, %p3573_p5 }
 0x744   :  { %3581 = shalt.err (!%p3578_p7)
}
 0x745   :  { %s3596_s10 = smov 128   ;;  %s3597_s11 = smov 8  }
 0x746   :  { %3286 = dma.vmem_to_hbm [thread:$0]  %s3281_s25, 256, %s4933_s7, [#allocation5], %s3596_s10, %s3596_s10, %s3597_s11  }
 0x747   :  { %3582 = dma.done.wait [#allocation5], 256  }
 0x748   :  { %3583 = vsyncadd [#allocation5], 4294967040 }
 0x749   :  { %3290 = vsyncpa [#allocation5], 1 }

</bundles_post_ra>
